<compile_context>
chip_gen: v6e
topology: v6e:2x2x1
jax: 0.10.0
libtpu: 0.0.40
codegen_flags: <defaults>
</compile_context>

<pallas_src>
import jax
import jax.numpy as jnp
from jax import lax
from jax.experimental import pallas as pl
from jax.experimental.pallas import tpu as pltpu

# ----- hyperparameters (Autoformer.__init__ defaults, small synthetic shapes) -----
BATCH = 2
SEQ_LEN = 16          # L
N_FEATURES = 4        # n_features
LENGTH_SIZE = 30      # length_size
OUT_PAD = 128         # lane-padded fc output width (sliced back to LENGTH_SIZE)
D_MODEL = 8
N_HEADS = 2
HEAD_DIM = D_MODEL // N_HEADS
D_FF = 64
E_LAYERS = 2
MA_KERNEL = 25        # series_decomp kernel_size
MA_PAD = (MA_KERNEL - 1) // 2
LN_EPS = 1e-5
ATTN_SCALE = 1.0 / (HEAD_DIM ** 0.5)
BL = BATCH * SEQ_LEN
SLAB_COLS = 128
NEG_INF = -1e30


# ----- static weight-slab layout (shared by host packer and kernel slicing) -----
def _make_layout():
    layout = {}
    row = 0

    def add(name, nrows, ncols, align=8):
        nonlocal row
        row = -(-row // align) * align
        layout[name] = (row, nrows, ncols)
        row += nrows

    add("w_in", N_FEATURES, D_MODEL)
    for l in range(E_LAYERS):
        add(f"w_qkv{l}", D_MODEL, 3 * D_MODEL)   # [Wq*scale | Wk | Wv]
        add(f"w_o{l}", D_MODEL, D_MODEL)
        add(f"w1{l}", D_MODEL, D_FF)
        add(f"w2{l}", D_FF, D_MODEL)
    add("w_fc", D_MODEL, OUT_PAD)
    # 1-row vectors (biases / LN affine), packed densely; block start is 8-aligned.
    add("b_in", 1, D_MODEL)
    for l in range(E_LAYERS):
        for nm, nc in ((f"b_qkv{l}", 3 * D_MODEL), (f"b_o{l}", D_MODEL),
                       (f"b1{l}", D_FF), (f"b2{l}", D_MODEL),
                       (f"g1{l}", D_MODEL), (f"be1{l}", D_MODEL),
                       (f"g2{l}", D_MODEL), (f"be2{l}", D_MODEL)):
            add(nm, 1, nc, align=1)
    add("g_enc", 1, D_MODEL, align=1)
    add("b_enc", 1, D_MODEL, align=1)
    add("b_fc", 1, OUT_PAD, align=1)
    return layout, -(-row // 8) * 8


LAYOUT, SLAB_ROWS = _make_layout()


# ----- in-kernel helpers -----
def _erf(x):
    # Abramowitz & Stegun 7.1.26 (|err| < 1.5e-7); matches nn.GELU()'s exact-erf
    # to ~f32 precision (the exp lands on the EUP slot).
    p = 0.3275911
    a1, a2, a3, a4, a5 = 0.254829592, -0.284496736, 1.421413741, -1.453152027, 1.061405429
    s = jnp.where(x >= 0.0, 1.0, -1.0)
    ax = jnp.abs(x)
    t = 1.0 / (1.0 + p * ax)
    poly = ((((a5 * t + a4) * t + a3) * t + a2) * t + a1) * t
    return s * (1.0 - poly * jnp.exp(-ax * ax))


def _gelu(x):
    return 0.5 * x * (1.0 + _erf(x * 0.7071067811865476))


def _layernorm(x, gamma, beta):
    mu = jnp.mean(x, axis=-1, keepdims=True)
    var = jnp.mean((x - mu) * (x - mu), axis=-1, keepdims=True)
    return (x - mu) * lax.rsqrt(var + LN_EPS) * gamma + beta


def _softmax(x):
    m = jnp.max(x, axis=-1, keepdims=True)
    e = jnp.exp(x - m)
    return e / jnp.sum(e, axis=-1, keepdims=True)   # exact division (tiny, safer)


# ----- kernel: single invocation, whole batch -----
def autoformer_kernel(x_ref, aux_ref, slab_ref, out_ref):
    def mat(name):
        r, nr, nc = LAYOUT[name]
        return slab_ref[r:r + nr, 0:nc]

    def vec(name):
        r, _, nc = LAYOUT[name]
        return slab_ref[r:r + 1, 0:nc]

    x = x_ref[...]                                                            # (BL, F)
    band = aux_ref[0]                                                         # (BL, BL)
    mask = aux_ref[1]                                                         # (BL, BL), 0 / -1e30

    # input projection on the flattened (B*L, F) slab
    h = jnp.dot(x, mat("w_in"), preferred_element_type=jnp.float32) + vec("b_in")

    # series_decomp: trend = AvgPool1d(25, stride=1, pad=12) with PyTorch defaults
    # (zero padding, count_include_pad=True) expressed as a block-diagonal banded
    # matrix built host-side.  Keep seasonality.
    trend = jnp.dot(band, h, preferred_element_type=jnp.float32)
    h = h - trend

    for l in range(E_LAYERS):
        # fused Q/K/V projection over all (batch, time) rows; scale folded into Wq/bq
        qkv = (jnp.dot(h, mat(f"w_qkv{l}"), preferred_element_type=jnp.float32)
               + vec(f"b_qkv{l}"))                                            # (BL, 3D)

        # multi-head softmax attention over the full (BL, BL) score matrix per head,
        # block-diagonal mask removes cross-batch pairs (dropout == identity).
        heads = []
        for hd in range(N_HEADS):
            lo = hd * HEAD_DIM
            qh = qkv[:, lo:lo + HEAD_DIM]                                     # (BL, HD)
            kh = qkv[:, D_MODEL + lo:D_MODEL + lo + HEAD_DIM]
            vh = qkv[:, 2 * D_MODEL + lo:2 * D_MODEL + lo + HEAD_DIM]
            scores = lax.dot_general(qh, kh, (((1,), (1,)), ((), ())),
                                     preferred_element_type=jnp.float32) + mask
            heads.append(jnp.dot(_softmax(scores), vh,
                                 preferred_element_type=jnp.float32))         # (BL, HD)
        attn = jnp.concatenate(heads, axis=-1)                                # (BL, D)
        attn = (jnp.dot(attn, mat(f"w_o{l}"), preferred_element_type=jnp.float32)
                + vec(f"b_o{l}"))

        h = _layernorm(h + attn, vec(f"g1{l}"), vec(f"be1{l}"))

        # feed-forward: Conv1d(k=1) == per-timestep Linear on the (BL, D) slab
        y = jnp.dot(h, mat(f"w1{l}"), preferred_element_type=jnp.float32) + vec(f"b1{l}")
        y = _gelu(y)
        y = jnp.dot(y, mat(f"w2{l}"), preferred_element_type=jnp.float32) + vec(f"b2{l}")
        h = _layernorm(h + y, vec(f"g2{l}"), vec(f"be2{l}"))

    # encoder output norm (my_Layernorm == plain LayerNorm in this spec)
    h = _layernorm(h, vec("g_enc"), vec("b_enc"))

    # fused epilogue: gather the last timestep of each batch element -> one matmul,
    # one lane-dense (B, 128) store.
    last = jnp.concatenate(
        [h[(b + 1) * SEQ_LEN - 1:(b + 1) * SEQ_LEN, :] for b in range(BATCH)], axis=0)
    out_ref[...] = (jnp.dot(last, mat("w_fc"), preferred_element_type=jnp.float32)
                    + vec("b_fc"))                                            # (B, OUT_PAD)


# ----- host-side constants: banded moving-average matrix + block-diag attn mask -----
def make_aux():
    idx = jnp.arange(SEQ_LEN)
    band = (jnp.abs(idx[:, None] - idx[None, :]) <= MA_PAD).astype(jnp.float32) / MA_KERNEL
    band_bd = jnp.kron(jnp.eye(BATCH, dtype=jnp.float32), band)               # (BL, BL)
    bidx = jnp.arange(BL) // SEQ_LEN
    mask = jnp.where(bidx[:, None] == bidx[None, :], 0.0, NEG_INF).astype(jnp.float32)
    return jnp.stack([band_bd, mask], axis=0)                                 # (2, BL, BL)


# ----- host-side weight packing into one flat slab -----
def pack_slab(p):
    slab = jnp.zeros((SLAB_ROWS, SLAB_COLS), jnp.float32)

    def put(s, name, arr):
        r, nr, nc = LAYOUT[name]
        assert arr.shape == (nr, nc), (name, arr.shape, (nr, nc))
        return s.at[r:r + nr, 0:nc].set(arr)

    slab = put(slab, "w_in", p["w_in"])
    slab = put(slab, "b_in", p["b_in"])
    for l in range(E_LAYERS):
        w_qkv = jnp.concatenate([p["wq"][l] * ATTN_SCALE, p["wk"][l], p["wv"][l]], axis=-1)
        b_qkv = jnp.concatenate([p["bq"][l] * ATTN_SCALE, p["bk"][l], p["bv"][l]], axis=-1)
        slab = put(slab, f"w_qkv{l}", w_qkv)
        slab = put(slab, f"b_qkv{l}", b_qkv)
        slab = put(slab, f"w_o{l}", p["wo"][l]);  slab = put(slab, f"b_o{l}", p["bo"][l])
        slab = put(slab, f"w1{l}", p["w1"][l]);   slab = put(slab, f"b1{l}", p["b1"][l])
        slab = put(slab, f"w2{l}", p["w2"][l]);   slab = put(slab, f"b2{l}", p["b2"][l])
        slab = put(slab, f"g1{l}", p["g1"][l]);   slab = put(slab, f"be1{l}", p["be1"][l])
        slab = put(slab, f"g2{l}", p["g2"][l]);   slab = put(slab, f"be2{l}", p["be2"][l])
    slab = put(slab, "g_enc", p["g_enc"])
    slab = put(slab, "b_enc", p["b_enc"])
    w_fc_pad = jnp.zeros((D_MODEL, OUT_PAD), jnp.float32).at[:, :LENGTH_SIZE].set(p["w_fc"])
    b_fc_pad = jnp.zeros((1, OUT_PAD), jnp.float32).at[:, :LENGTH_SIZE].set(p["b_fc"])
    slab = put(slab, "w_fc", w_fc_pad)
    slab = put(slab, "b_fc", b_fc_pad)
    return slab


# ----- wrapper -----
def autoformer_forward(x, params):
    B, L, F = x.shape
    assert (B, L, F) == (BATCH, SEQ_LEN, N_FEATURES)
    x_flat = x.reshape(B * L, F)
    aux = make_aux()
    slab = pack_slab(params)

    vmem = pl.BlockSpec(memory_space=pltpu.MemorySpace.VMEM)
    out = pl.pallas_call(
        autoformer_kernel,
        out_shape=jax.ShapeDtypeStruct((B, OUT_PAD), jnp.float32),
        in_specs=[vmem, vmem, vmem],
        out_specs=vmem,
    )(x_flat, aux, slab)
    return out[:, :LENGTH_SIZE]                                               # (B, LENGTH_SIZE)


# ----- deterministic parameter init (synthetic; shapes from Autoformer.__init__) -----
def init_params(key):
    ks = list(jax.random.split(key, 16))

    def nrm(k, shape, scale=0.1):
        return scale * jax.random.normal(k, shape, dtype=jnp.float32)

    p = {}
    p["w_in"] = nrm(ks[0], (N_FEATURES, D_MODEL))
    p["b_in"] = nrm(ks[1], (1, D_MODEL), 0.02)
    # q/k/v/out projections are full d_model -> d_model Linears (heads split by reshape)
    p["wq"] = nrm(ks[2], (E_LAYERS, D_MODEL, D_MODEL))
    p["bq"] = nrm(ks[3], (E_LAYERS, 1, D_MODEL), 0.02)
    p["wk"] = nrm(ks[4], (E_LAYERS, D_MODEL, D_MODEL))
    p["bk"] = nrm(ks[5], (E_LAYERS, 1, D_MODEL), 0.02)
    p["wv"] = nrm(ks[6], (E_LAYERS, D_MODEL, D_MODEL))
    p["bv"] = nrm(ks[7], (E_LAYERS, 1, D_MODEL), 0.02)
    p["wo"] = nrm(ks[8], (E_LAYERS, D_MODEL, D_MODEL))
    p["bo"] = nrm(ks[9], (E_LAYERS, 1, D_MODEL), 0.02)
    p["w1"] = nrm(ks[10], (E_LAYERS, D_MODEL, D_FF))
    p["b1"] = nrm(ks[11], (E_LAYERS, 1, D_FF), 0.02)
    p["w2"] = nrm(ks[12], (E_LAYERS, D_FF, D_MODEL))
    p["b2"] = nrm(ks[13], (E_LAYERS, 1, D_MODEL), 0.02)
    # LayerNorm params (PyTorch default init: weight=1, bias=0)
    p["g1"] = jnp.ones((E_LAYERS, 1, D_MODEL), jnp.float32)
    p["be1"] = jnp.zeros((E_LAYERS, 1, D_MODEL), jnp.float32)
    p["g2"] = jnp.ones((E_LAYERS, 1, D_MODEL), jnp.float32)
    p["be2"] = jnp.zeros((E_LAYERS, 1, D_MODEL), jnp.float32)
    p["g_enc"] = jnp.ones((1, D_MODEL), jnp.float32)
    p["b_enc"] = jnp.zeros((1, D_MODEL), jnp.float32)
    p["w_fc"] = nrm(ks[14], (D_MODEL, LENGTH_SIZE))
    p["b_fc"] = nrm(ks[15], (1, LENGTH_SIZE), 0.02)
    return p


if __name__ == "__main__":
    key = jax.random.PRNGKey(0)
    k_x, k_p = jax.random.split(key)
    x = jax.random.normal(k_x, (BATCH, SEQ_LEN, N_FEATURES), dtype=jnp.float32)
    params = init_params(k_p)

    out = autoformer_forward(x, params)
    out = jax.block_until_ready(out)
    assert out.shape == (BATCH, LENGTH_SIZE)
    assert bool(jnp.all(jnp.isfinite(out)))
    print("KERNEL_OK")
</pallas_src>

<mosaic_0001>
module attributes {stable_mosaic.version = 11 : i64} {
  func.func @autoformer_kernel(%arg0: memref<32x4xf32, #tpu.memory_space<vmem>>, %arg1: memref<2x32x32xf32, #tpu.memory_space<vmem>>, %arg2: memref<216x128xf32, #tpu.memory_space<vmem>>, %arg3: memref<2x128xf32, #tpu.memory_space<vmem>>) attributes {dimension_semantics = [], scalar_prefetch = 0 : i64, scratch_operands = 0 : i64, tpu.core_type = #tpu.core_type<tc>} {
    %c0 = arith.constant 0 : index
    %c0_0 = arith.constant 0 : index
    %0 = vector.load %arg0[%c0, %c0_0] : memref<32x4xf32, #tpu.memory_space<vmem>>, vector<32x4xf32>
    %c0_1 = arith.constant 0 : index
    %c0_2 = arith.constant 0 : index
    %c0_3 = arith.constant 0 : index
    %1 = vector.load %arg1[%c0_1, %c0_2, %c0_3] : memref<2x32x32xf32, #tpu.memory_space<vmem>>, vector<1x32x32xf32>
    %2 = vector.shape_cast %1 : vector<1x32x32xf32> to vector<32x32xf32>
    %c1 = arith.constant 1 : index
    %c0_4 = arith.constant 0 : index
    %c0_5 = arith.constant 0 : index
    %3 = vector.load %arg1[%c1, %c0_4, %c0_5] : memref<2x32x32xf32, #tpu.memory_space<vmem>>, vector<1x32x32xf32>
    %4 = vector.shape_cast %3 : vector<1x32x32xf32> to vector<32x32xf32>
    %c0_6 = arith.constant 0 : index
    %c0_7 = arith.constant 0 : index
    %5 = vector.load %arg2[%c0_6, %c0_7] : memref<216x128xf32, #tpu.memory_space<vmem>>, vector<4x8xf32>
    %cst = arith.constant dense<0.000000e+00> : vector<32x8xf32>
    %6 = tpu.matmul %0, %5, %cst {dimension_numbers = #tpu.dot_dimension_numbers<[1], [0], [0], [1], [0, 0, 1, 1], [], []>} : vector<32x4xf32>, vector<4x8xf32>, vector<32x8xf32> -> vector<32x8xf32>
    %c192 = arith.constant 192 : index
    %c0_8 = arith.constant 0 : index
    %7 = vector.load %arg2[%c192, %c0_8] : memref<216x128xf32, #tpu.memory_space<vmem>>, vector<1x8xf32>
    %8 = vector.broadcast %7 : vector<1x8xf32> to vector<32x8xf32>
    %9 = arith.addf %6, %8 : vector<32x8xf32>
    %cst_9 = arith.constant dense<0.000000e+00> : vector<32x8xf32>
    %10 = tpu.matmul %2, %9, %cst_9 {dimension_numbers = #tpu.dot_dimension_numbers<[1], [0], [0], [1], [0, 0, 1, 1], [], []>} : vector<32x32xf32>, vector<32x8xf32>, vector<32x8xf32> -> vector<32x8xf32>
    %11 = arith.subf %9, %10 : vector<32x8xf32>
    %c8 = arith.constant 8 : index
    %c0_10 = arith.constant 0 : index
    %12 = vector.load %arg2[%c8, %c0_10] : memref<216x128xf32, #tpu.memory_space<vmem>>, vector<8x24xf32>
    %cst_11 = arith.constant dense<0.000000e+00> : vector<32x24xf32>
    %13 = tpu.matmul %11, %12, %cst_11 {dimension_numbers = #tpu.dot_dimension_numbers<[1], [0], [0], [1], [0, 0, 1, 1], [], []>} : vector<32x8xf32>, vector<8x24xf32>, vector<32x24xf32> -> vector<32x24xf32>
    %c193 = arith.constant 193 : index
    %c0_12 = arith.constant 0 : index
    %14 = vector.load %arg2[%c193, %c0_12] : memref<216x128xf32, #tpu.memory_space<vmem>>, vector<1x24xf32>
    %15 = vector.broadcast %14 : vector<1x24xf32> to vector<32x24xf32>
    %16 = arith.addf %13, %15 : vector<32x24xf32>
    %17 = vector.extract_strided_slice %16 {offsets = [0, 0], sizes = [32, 4], strides = [1, 1]} : vector<32x24xf32> to vector<32x4xf32>
    %18 = vector.extract_strided_slice %16 {offsets = [0, 8], sizes = [32, 4], strides = [1, 1]} : vector<32x24xf32> to vector<32x4xf32>
    %19 = vector.extract_strided_slice %16 {offsets = [0, 16], sizes = [32, 4], strides = [1, 1]} : vector<32x24xf32> to vector<32x4xf32>
    %cst_13 = arith.constant dense<0.000000e+00> : vector<32x32xf32>
    %20 = tpu.matmul %17, %18, %cst_13 {dimension_numbers = #tpu.dot_dimension_numbers<[1], [1], [0], [0], [0, 0, 1, 0], [], []>} : vector<32x4xf32>, vector<32x4xf32>, vector<32x32xf32> -> vector<32x32xf32>
    %21 = arith.addf %20, %4 : vector<32x32xf32>
    %cst_14 = arith.constant dense<0xFF800000> : vector<32xf32>
    %22 = vector.multi_reduction <maximumf>, %21, %cst_14 [1] : vector<32x32xf32> to vector<32xf32>
    %23 = vector.shape_cast %22 : vector<32xf32> to vector<32x1xf32>
    %24 = vector.broadcast %23 : vector<32x1xf32> to vector<32x32xf32>
    %25 = arith.subf %21, %24 : vector<32x32xf32>
    %26 = math.exp %25 : vector<32x32xf32>
    %cst_15 = arith.constant dense<0.000000e+00> : vector<32xf32>
    %27 = vector.multi_reduction <add>, %26, %cst_15 [1] : vector<32x32xf32> to vector<32xf32>
    %28 = vector.shape_cast %27 : vector<32xf32> to vector<32x1xf32>
    %29 = vector.broadcast %28 : vector<32x1xf32> to vector<32x32xf32>
    %30 = arith.divf %26, %29 : vector<32x32xf32>
    %cst_16 = arith.constant dense<0.000000e+00> : vector<32x4xf32>
    %31 = tpu.matmul %30, %19, %cst_16 {dimension_numbers = #tpu.dot_dimension_numbers<[1], [0], [0], [1], [0, 0, 1, 1], [], []>} : vector<32x32xf32>, vector<32x4xf32>, vector<32x4xf32> -> vector<32x4xf32>
    %32 = vector.extract_strided_slice %16 {offsets = [0, 4], sizes = [32, 4], strides = [1, 1]} : vector<32x24xf32> to vector<32x4xf32>
    %33 = vector.extract_strided_slice %16 {offsets = [0, 12], sizes = [32, 4], strides = [1, 1]} : vector<32x24xf32> to vector<32x4xf32>
    %34 = vector.extract_strided_slice %16 {offsets = [0, 20], sizes = [32, 4], strides = [1, 1]} : vector<32x24xf32> to vector<32x4xf32>
    %cst_17 = arith.constant dense<0.000000e+00> : vector<32x32xf32>
    %35 = tpu.matmul %32, %33, %cst_17 {dimension_numbers = #tpu.dot_dimension_numbers<[1], [1], [0], [0], [0, 0, 1, 0], [], []>} : vector<32x4xf32>, vector<32x4xf32>, vector<32x32xf32> -> vector<32x32xf32>
    %36 = arith.addf %35, %4 : vector<32x32xf32>
    %cst_18 = arith.constant dense<0xFF800000> : vector<32xf32>
    %37 = vector.multi_reduction <maximumf>, %36, %cst_18 [1] : vector<32x32xf32> to vector<32xf32>
    %38 = vector.shape_cast %37 : vector<32xf32> to vector<32x1xf32>
    %39 = vector.broadcast %38 : vector<32x1xf32> to vector<32x32xf32>
    %40 = arith.subf %36, %39 : vector<32x32xf32>
    %41 = math.exp %40 : vector<32x32xf32>
    %cst_19 = arith.constant dense<0.000000e+00> : vector<32xf32>
    %42 = vector.multi_reduction <add>, %41, %cst_19 [1] : vector<32x32xf32> to vector<32xf32>
    %43 = vector.shape_cast %42 : vector<32xf32> to vector<32x1xf32>
    %44 = vector.broadcast %43 : vector<32x1xf32> to vector<32x32xf32>
    %45 = arith.divf %41, %44 : vector<32x32xf32>
    %cst_20 = arith.constant dense<0.000000e+00> : vector<32x4xf32>
    %46 = tpu.matmul %45, %34, %cst_20 {dimension_numbers = #tpu.dot_dimension_numbers<[1], [0], [0], [1], [0, 0, 1, 1], [], []>} : vector<32x32xf32>, vector<32x4xf32>, vector<32x4xf32> -> vector<32x4xf32>
    %47 = tpu.concatenate %31, %46 in 1 : vector<32x4xf32>, vector<32x4xf32> -> vector<32x8xf32>
    %c16 = arith.constant 16 : index
    %c0_21 = arith.constant 0 : index
    %48 = vector.load %arg2[%c16, %c0_21] : memref<216x128xf32, #tpu.memory_space<vmem>>, vector<8x8xf32>
    %cst_22 = arith.constant dense<0.000000e+00> : vector<32x8xf32>
    %49 = tpu.matmul %47, %48, %cst_22 {dimension_numbers = #tpu.dot_dimension_numbers<[1], [0], [0], [1], [0, 0, 1, 1], [], []>} : vector<32x8xf32>, vector<8x8xf32>, vector<32x8xf32> -> vector<32x8xf32>
    %c194 = arith.constant 194 : index
    %c0_23 = arith.constant 0 : index
    %50 = vector.load %arg2[%c194, %c0_23] : memref<216x128xf32, #tpu.memory_space<vmem>>, vector<1x8xf32>
    %51 = vector.broadcast %50 : vector<1x8xf32> to vector<32x8xf32>
    %52 = arith.addf %49, %51 : vector<32x8xf32>
    %53 = arith.addf %11, %52 : vector<32x8xf32>
    %c197 = arith.constant 197 : index
    %c0_24 = arith.constant 0 : index
    %54 = vector.load %arg2[%c197, %c0_24] : memref<216x128xf32, #tpu.memory_space<vmem>>, vector<1x8xf32>
    %c198 = arith.constant 198 : index
    %c0_25 = arith.constant 0 : index
    %55 = vector.load %arg2[%c198, %c0_25] : memref<216x128xf32, #tpu.memory_space<vmem>>, vector<1x8xf32>
    %cst_26 = arith.constant dense<0.000000e+00> : vector<32xf32>
    %56 = vector.multi_reduction <add>, %53, %cst_26 [1] : vector<32x8xf32> to vector<32xf32>
    %57 = vector.shape_cast %56 : vector<32xf32> to vector<32x1xf32>
    %cst_27 = arith.constant 8.000000e+00 : f32
    %58 = vector.broadcast %cst_27 : f32 to vector<32x1xf32>
    %59 = arith.divf %57, %58 : vector<32x1xf32>
    %60 = vector.broadcast %59 : vector<32x1xf32> to vector<32x8xf32>
    %61 = arith.subf %53, %60 : vector<32x8xf32>
    %62 = vector.broadcast %59 : vector<32x1xf32> to vector<32x8xf32>
    %63 = arith.subf %53, %62 : vector<32x8xf32>
    %64 = arith.mulf %61, %63 : vector<32x8xf32>
    %cst_28 = arith.constant dense<0.000000e+00> : vector<32xf32>
    %65 = vector.multi_reduction <add>, %64, %cst_28 [1] : vector<32x8xf32> to vector<32xf32>
    %66 = vector.shape_cast %65 : vector<32xf32> to vector<32x1xf32>
    %cst_29 = arith.constant 8.000000e+00 : f32
    %67 = vector.broadcast %cst_29 : f32 to vector<32x1xf32>
    %68 = arith.divf %66, %67 : vector<32x1xf32>
    %69 = vector.broadcast %59 : vector<32x1xf32> to vector<32x8xf32>
    %70 = arith.subf %53, %69 : vector<32x8xf32>
    %cst_30 = arith.constant 9.99999974E-6 : f32
    %71 = vector.broadcast %cst_30 : f32 to vector<32x1xf32>
    %72 = arith.addf %68, %71 : vector<32x1xf32>
    %73 = math.rsqrt %72 : vector<32x1xf32>
    %74 = vector.broadcast %73 : vector<32x1xf32> to vector<32x8xf32>
    %75 = arith.mulf %70, %74 : vector<32x8xf32>
    %76 = vector.broadcast %54 : vector<1x8xf32> to vector<32x8xf32>
    %77 = arith.mulf %75, %76 : vector<32x8xf32>
    %78 = vector.broadcast %55 : vector<1x8xf32> to vector<32x8xf32>
    %79 = arith.addf %77, %78 : vector<32x8xf32>
    %c24 = arith.constant 24 : index
    %c0_31 = arith.constant 0 : index
    %80 = vector.load %arg2[%c24, %c0_31] : memref<216x128xf32, #tpu.memory_space<vmem>>, vector<8x64xf32>
    %cst_32 = arith.constant dense<0.000000e+00> : vector<32x64xf32>
    %81 = tpu.matmul %79, %80, %cst_32 {dimension_numbers = #tpu.dot_dimension_numbers<[1], [0], [0], [1], [0, 0, 1, 1], [], []>} : vector<32x8xf32>, vector<8x64xf32>, vector<32x64xf32> -> vector<32x64xf32>
    %c195 = arith.constant 195 : index
    %c0_33 = arith.constant 0 : index
    %82 = vector.load %arg2[%c195, %c0_33] : memref<216x128xf32, #tpu.memory_space<vmem>>, vector<1x64xf32>
    %83 = vector.broadcast %82 : vector<1x64xf32> to vector<32x64xf32>
    %84 = arith.addf %81, %83 : vector<32x64xf32>
    %cst_34 = arith.constant 5.000000e-01 : f32
    %85 = vector.broadcast %cst_34 : f32 to vector<32x64xf32>
    %86 = arith.mulf %85, %84 : vector<32x64xf32>
    %cst_35 = arith.constant 0.707106769 : f32
    %87 = vector.broadcast %cst_35 : f32 to vector<32x64xf32>
    %88 = arith.mulf %84, %87 : vector<32x64xf32>
    %cst_36 = arith.constant 0.000000e+00 : f32
    %89 = vector.broadcast %cst_36 : f32 to vector<32x64xf32>
    %90 = arith.cmpf oge, %88, %89 : vector<32x64xf32>
    %cst_37 = arith.constant 1.000000e+00 : f32
    %cst_38 = arith.constant -1.000000e+00 : f32
    %91 = vector.broadcast %cst_37 : f32 to vector<32x64xf32>
    %92 = vector.broadcast %cst_38 : f32 to vector<32x64xf32>
    %93 = arith.select %90, %91, %92 : vector<32x64xi1>, vector<32x64xf32>
    %94 = math.absf %88 : vector<32x64xf32>
    %cst_39 = arith.constant 0.327591091 : f32
    %95 = vector.broadcast %cst_39 : f32 to vector<32x64xf32>
    %96 = arith.mulf %95, %94 : vector<32x64xf32>
    %cst_40 = arith.constant 1.000000e+00 : f32
    %97 = vector.broadcast %cst_40 : f32 to vector<32x64xf32>
    %98 = arith.addf %97, %96 : vector<32x64xf32>
    %cst_41 = arith.constant 1.000000e+00 : f32
    %99 = vector.broadcast %cst_41 : f32 to vector<32x64xf32>
    %100 = arith.divf %99, %98 : vector<32x64xf32>
    %cst_42 = arith.constant 1.06140542 : f32
    %101 = vector.broadcast %cst_42 : f32 to vector<32x64xf32>
    %102 = arith.mulf %101, %100 : vector<32x64xf32>
    %cst_43 = arith.constant -1.45315206 : f32
    %103 = vector.broadcast %cst_43 : f32 to vector<32x64xf32>
    %104 = arith.addf %102, %103 : vector<32x64xf32>
    %105 = arith.mulf %104, %100 : vector<32x64xf32>
    %cst_44 = arith.constant 1.42141378 : f32
    %106 = vector.broadcast %cst_44 : f32 to vector<32x64xf32>
    %107 = arith.addf %105, %106 : vector<32x64xf32>
    %108 = arith.mulf %107, %100 : vector<32x64xf32>
    %cst_45 = arith.constant -0.284496725 : f32
    %109 = vector.broadcast %cst_45 : f32 to vector<32x64xf32>
    %110 = arith.addf %108, %109 : vector<32x64xf32>
    %111 = arith.mulf %110, %100 : vector<32x64xf32>
    %cst_46 = arith.constant 0.254829586 : f32
    %112 = vector.broadcast %cst_46 : f32 to vector<32x64xf32>
    %113 = arith.addf %111, %112 : vector<32x64xf32>
    %114 = arith.mulf %113, %100 : vector<32x64xf32>
    %cst_47 = arith.constant 0.000000e+00 : f32
    %115 = vector.broadcast %cst_47 : f32 to vector<32x64xf32>
    %116 = arith.subf %115, %94 : vector<32x64xf32>
    %117 = arith.mulf %116, %94 : vector<32x64xf32>
    %118 = math.exp %117 : vector<32x64xf32>
    %119 = arith.mulf %114, %118 : vector<32x64xf32>
    %cst_48 = arith.constant 1.000000e+00 : f32
    %120 = vector.broadcast %cst_48 : f32 to vector<32x64xf32>
    %121 = arith.subf %120, %119 : vector<32x64xf32>
    %122 = arith.mulf %93, %121 : vector<32x64xf32>
    %cst_49 = arith.constant 1.000000e+00 : f32
    %123 = vector.broadcast %cst_49 : f32 to vector<32x64xf32>
    %124 = arith.addf %123, %122 : vector<32x64xf32>
    %125 = arith.mulf %86, %124 : vector<32x64xf32>
    %c32 = arith.constant 32 : index
    %c0_50 = arith.constant 0 : index
    %126 = vector.load %arg2[%c32, %c0_50] : memref<216x128xf32, #tpu.memory_space<vmem>>, vector<64x8xf32>
    %cst_51 = arith.constant dense<0.000000e+00> : vector<32x8xf32>
    %127 = tpu.matmul %125, %126, %cst_51 {dimension_numbers = #tpu.dot_dimension_numbers<[1], [0], [0], [1], [0, 0, 1, 1], [], []>} : vector<32x64xf32>, vector<64x8xf32>, vector<32x8xf32> -> vector<32x8xf32>
    %c196 = arith.constant 196 : index
    %c0_52 = arith.constant 0 : index
    %128 = vector.load %arg2[%c196, %c0_52] : memref<216x128xf32, #tpu.memory_space<vmem>>, vector<1x8xf32>
    %129 = vector.broadcast %128 : vector<1x8xf32> to vector<32x8xf32>
    %130 = arith.addf %127, %129 : vector<32x8xf32>
    %131 = arith.addf %79, %130 : vector<32x8xf32>
    %c199 = arith.constant 199 : index
    %c0_53 = arith.constant 0 : index
    %132 = vector.load %arg2[%c199, %c0_53] : memref<216x128xf32, #tpu.memory_space<vmem>>, vector<1x8xf32>
    %c200 = arith.constant 200 : index
    %c0_54 = arith.constant 0 : index
    %133 = vector.load %arg2[%c200, %c0_54] : memref<216x128xf32, #tpu.memory_space<vmem>>, vector<1x8xf32>
    %cst_55 = arith.constant dense<0.000000e+00> : vector<32xf32>
    %134 = vector.multi_reduction <add>, %131, %cst_55 [1] : vector<32x8xf32> to vector<32xf32>
    %135 = vector.shape_cast %134 : vector<32xf32> to vector<32x1xf32>
    %cst_56 = arith.constant 8.000000e+00 : f32
    %136 = vector.broadcast %cst_56 : f32 to vector<32x1xf32>
    %137 = arith.divf %135, %136 : vector<32x1xf32>
    %138 = vector.broadcast %137 : vector<32x1xf32> to vector<32x8xf32>
    %139 = arith.subf %131, %138 : vector<32x8xf32>
    %140 = vector.broadcast %137 : vector<32x1xf32> to vector<32x8xf32>
    %141 = arith.subf %131, %140 : vector<32x8xf32>
    %142 = arith.mulf %139, %141 : vector<32x8xf32>
    %cst_57 = arith.constant dense<0.000000e+00> : vector<32xf32>
    %143 = vector.multi_reduction <add>, %142, %cst_57 [1] : vector<32x8xf32> to vector<32xf32>
    %144 = vector.shape_cast %143 : vector<32xf32> to vector<32x1xf32>
    %cst_58 = arith.constant 8.000000e+00 : f32
    %145 = vector.broadcast %cst_58 : f32 to vector<32x1xf32>
    %146 = arith.divf %144, %145 : vector<32x1xf32>
    %147 = vector.broadcast %137 : vector<32x1xf32> to vector<32x8xf32>
    %148 = arith.subf %131, %147 : vector<32x8xf32>
    %cst_59 = arith.constant 9.99999974E-6 : f32
    %149 = vector.broadcast %cst_59 : f32 to vector<32x1xf32>
    %150 = arith.addf %146, %149 : vector<32x1xf32>
    %151 = math.rsqrt %150 : vector<32x1xf32>
    %152 = vector.broadcast %151 : vector<32x1xf32> to vector<32x8xf32>
    %153 = arith.mulf %148, %152 : vector<32x8xf32>
    %154 = vector.broadcast %132 : vector<1x8xf32> to vector<32x8xf32>
    %155 = arith.mulf %153, %154 : vector<32x8xf32>
    %156 = vector.broadcast %133 : vector<1x8xf32> to vector<32x8xf32>
    %157 = arith.addf %155, %156 : vector<32x8xf32>
    %c96 = arith.constant 96 : index
    %c0_60 = arith.constant 0 : index
    %158 = vector.load %arg2[%c96, %c0_60] : memref<216x128xf32, #tpu.memory_space<vmem>>, vector<8x24xf32>
    %cst_61 = arith.constant dense<0.000000e+00> : vector<32x24xf32>
    %159 = tpu.matmul %157, %158, %cst_61 {dimension_numbers = #tpu.dot_dimension_numbers<[1], [0], [0], [1], [0, 0, 1, 1], [], []>} : vector<32x8xf32>, vector<8x24xf32>, vector<32x24xf32> -> vector<32x24xf32>
    %c201 = arith.constant 201 : index
    %c0_62 = arith.constant 0 : index
    %160 = vector.load %arg2[%c201, %c0_62] : memref<216x128xf32, #tpu.memory_space<vmem>>, vector<1x24xf32>
    %161 = vector.broadcast %160 : vector<1x24xf32> to vector<32x24xf32>
    %162 = arith.addf %159, %161 : vector<32x24xf32>
    %163 = vector.extract_strided_slice %162 {offsets = [0, 0], sizes = [32, 4], strides = [1, 1]} : vector<32x24xf32> to vector<32x4xf32>
    %164 = vector.extract_strided_slice %162 {offsets = [0, 8], sizes = [32, 4], strides = [1, 1]} : vector<32x24xf32> to vector<32x4xf32>
    %165 = vector.extract_strided_slice %162 {offsets = [0, 16], sizes = [32, 4], strides = [1, 1]} : vector<32x24xf32> to vector<32x4xf32>
    %cst_63 = arith.constant dense<0.000000e+00> : vector<32x32xf32>
    %166 = tpu.matmul %163, %164, %cst_63 {dimension_numbers = #tpu.dot_dimension_numbers<[1], [1], [0], [0], [0, 0, 1, 0], [], []>} : vector<32x4xf32>, vector<32x4xf32>, vector<32x32xf32> -> vector<32x32xf32>
    %167 = arith.addf %166, %4 : vector<32x32xf32>
    %cst_64 = arith.constant dense<0xFF800000> : vector<32xf32>
    %168 = vector.multi_reduction <maximumf>, %167, %cst_64 [1] : vector<32x32xf32> to vector<32xf32>
    %169 = vector.shape_cast %168 : vector<32xf32> to vector<32x1xf32>
    %170 = vector.broadcast %169 : vector<32x1xf32> to vector<32x32xf32>
    %171 = arith.subf %167, %170 : vector<32x32xf32>
    %172 = math.exp %171 : vector<32x32xf32>
    %cst_65 = arith.constant dense<0.000000e+00> : vector<32xf32>
    %173 = vector.multi_reduction <add>, %172, %cst_65 [1] : vector<32x32xf32> to vector<32xf32>
    %174 = vector.shape_cast %173 : vector<32xf32> to vector<32x1xf32>
    %175 = vector.broadcast %174 : vector<32x1xf32> to vector<32x32xf32>
    %176 = arith.divf %172, %175 : vector<32x32xf32>
    %cst_66 = arith.constant dense<0.000000e+00> : vector<32x4xf32>
    %177 = tpu.matmul %176, %165, %cst_66 {dimension_numbers = #tpu.dot_dimension_numbers<[1], [0], [0], [1], [0, 0, 1, 1], [], []>} : vector<32x32xf32>, vector<32x4xf32>, vector<32x4xf32> -> vector<32x4xf32>
    %178 = vector.extract_strided_slice %162 {offsets = [0, 4], sizes = [32, 4], strides = [1, 1]} : vector<32x24xf32> to vector<32x4xf32>
    %179 = vector.extract_strided_slice %162 {offsets = [0, 12], sizes = [32, 4], strides = [1, 1]} : vector<32x24xf32> to vector<32x4xf32>
    %180 = vector.extract_strided_slice %162 {offsets = [0, 20], sizes = [32, 4], strides = [1, 1]} : vector<32x24xf32> to vector<32x4xf32>
    %cst_67 = arith.constant dense<0.000000e+00> : vector<32x32xf32>
    %181 = tpu.matmul %178, %179, %cst_67 {dimension_numbers = #tpu.dot_dimension_numbers<[1], [1], [0], [0], [0, 0, 1, 0], [], []>} : vector<32x4xf32>, vector<32x4xf32>, vector<32x32xf32> -> vector<32x32xf32>
    %182 = arith.addf %181, %4 : vector<32x32xf32>
    %cst_68 = arith.constant dense<0xFF800000> : vector<32xf32>
    %183 = vector.multi_reduction <maximumf>, %182, %cst_68 [1] : vector<32x32xf32> to vector<32xf32>
    %184 = vector.shape_cast %183 : vector<32xf32> to vector<32x1xf32>
    %185 = vector.broadcast %184 : vector<32x1xf32> to vector<32x32xf32>
    %186 = arith.subf %182, %185 : vector<32x32xf32>
    %187 = math.exp %186 : vector<32x32xf32>
    %cst_69 = arith.constant dense<0.000000e+00> : vector<32xf32>
    %188 = vector.multi_reduction <add>, %187, %cst_69 [1] : vector<32x32xf32> to vector<32xf32>
    %189 = vector.shape_cast %188 : vector<32xf32> to vector<32x1xf32>
    %190 = vector.broadcast %189 : vector<32x1xf32> to vector<32x32xf32>
    %191 = arith.divf %187, %190 : vector<32x32xf32>
    %cst_70 = arith.constant dense<0.000000e+00> : vector<32x4xf32>
    %192 = tpu.matmul %191, %180, %cst_70 {dimension_numbers = #tpu.dot_dimension_numbers<[1], [0], [0], [1], [0, 0, 1, 1], [], []>} : vector<32x32xf32>, vector<32x4xf32>, vector<32x4xf32> -> vector<32x4xf32>
    %193 = tpu.concatenate %177, %192 in 1 : vector<32x4xf32>, vector<32x4xf32> -> vector<32x8xf32>
    %c104 = arith.constant 104 : index
    %c0_71 = arith.constant 0 : index
    %194 = vector.load %arg2[%c104, %c0_71] : memref<216x128xf32, #tpu.memory_space<vmem>>, vector<8x8xf32>
    %cst_72 = arith.constant dense<0.000000e+00> : vector<32x8xf32>
    %195 = tpu.matmul %193, %194, %cst_72 {dimension_numbers = #tpu.dot_dimension_numbers<[1], [0], [0], [1], [0, 0, 1, 1], [], []>} : vector<32x8xf32>, vector<8x8xf32>, vector<32x8xf32> -> vector<32x8xf32>
    %c202 = arith.constant 202 : index
    %c0_73 = arith.constant 0 : index
    %196 = vector.load %arg2[%c202, %c0_73] : memref<216x128xf32, #tpu.memory_space<vmem>>, vector<1x8xf32>
    %197 = vector.broadcast %196 : vector<1x8xf32> to vector<32x8xf32>
    %198 = arith.addf %195, %197 : vector<32x8xf32>
    %199 = arith.addf %157, %198 : vector<32x8xf32>
    %c205 = arith.constant 205 : index
    %c0_74 = arith.constant 0 : index
    %200 = vector.load %arg2[%c205, %c0_74] : memref<216x128xf32, #tpu.memory_space<vmem>>, vector<1x8xf32>
    %c206 = arith.constant 206 : index
    %c0_75 = arith.constant 0 : index
    %201 = vector.load %arg2[%c206, %c0_75] : memref<216x128xf32, #tpu.memory_space<vmem>>, vector<1x8xf32>
    %cst_76 = arith.constant dense<0.000000e+00> : vector<32xf32>
    %202 = vector.multi_reduction <add>, %199, %cst_76 [1] : vector<32x8xf32> to vector<32xf32>
    %203 = vector.shape_cast %202 : vector<32xf32> to vector<32x1xf32>
    %cst_77 = arith.constant 8.000000e+00 : f32
    %204 = vector.broadcast %cst_77 : f32 to vector<32x1xf32>
    %205 = arith.divf %203, %204 : vector<32x1xf32>
    %206 = vector.broadcast %205 : vector<32x1xf32> to vector<32x8xf32>
    %207 = arith.subf %199, %206 : vector<32x8xf32>
    %208 = vector.broadcast %205 : vector<32x1xf32> to vector<32x8xf32>
    %209 = arith.subf %199, %208 : vector<32x8xf32>
    %210 = arith.mulf %207, %209 : vector<32x8xf32>
    %cst_78 = arith.constant dense<0.000000e+00> : vector<32xf32>
    %211 = vector.multi_reduction <add>, %210, %cst_78 [1] : vector<32x8xf32> to vector<32xf32>
    %212 = vector.shape_cast %211 : vector<32xf32> to vector<32x1xf32>
    %cst_79 = arith.constant 8.000000e+00 : f32
    %213 = vector.broadcast %cst_79 : f32 to vector<32x1xf32>
    %214 = arith.divf %212, %213 : vector<32x1xf32>
    %215 = vector.broadcast %205 : vector<32x1xf32> to vector<32x8xf32>
    %216 = arith.subf %199, %215 : vector<32x8xf32>
    %cst_80 = arith.constant 9.99999974E-6 : f32
    %217 = vector.broadcast %cst_80 : f32 to vector<32x1xf32>
    %218 = arith.addf %214, %217 : vector<32x1xf32>
    %219 = math.rsqrt %218 : vector<32x1xf32>
    %220 = vector.broadcast %219 : vector<32x1xf32> to vector<32x8xf32>
    %221 = arith.mulf %216, %220 : vector<32x8xf32>
    %222 = vector.broadcast %200 : vector<1x8xf32> to vector<32x8xf32>
    %223 = arith.mulf %221, %222 : vector<32x8xf32>
    %224 = vector.broadcast %201 : vector<1x8xf32> to vector<32x8xf32>
    %225 = arith.addf %223, %224 : vector<32x8xf32>
    %c112 = arith.constant 112 : index
    %c0_81 = arith.constant 0 : index
    %226 = vector.load %arg2[%c112, %c0_81] : memref<216x128xf32, #tpu.memory_space<vmem>>, vector<8x64xf32>
    %cst_82 = arith.constant dense<0.000000e+00> : vector<32x64xf32>
    %227 = tpu.matmul %225, %226, %cst_82 {dimension_numbers = #tpu.dot_dimension_numbers<[1], [0], [0], [1], [0, 0, 1, 1], [], []>} : vector<32x8xf32>, vector<8x64xf32>, vector<32x64xf32> -> vector<32x64xf32>
    %c203 = arith.constant 203 : index
    %c0_83 = arith.constant 0 : index
    %228 = vector.load %arg2[%c203, %c0_83] : memref<216x128xf32, #tpu.memory_space<vmem>>, vector<1x64xf32>
    %229 = vector.broadcast %228 : vector<1x64xf32> to vector<32x64xf32>
    %230 = arith.addf %227, %229 : vector<32x64xf32>
    %cst_84 = arith.constant 5.000000e-01 : f32
    %231 = vector.broadcast %cst_84 : f32 to vector<32x64xf32>
    %232 = arith.mulf %231, %230 : vector<32x64xf32>
    %cst_85 = arith.constant 0.707106769 : f32
    %233 = vector.broadcast %cst_85 : f32 to vector<32x64xf32>
    %234 = arith.mulf %230, %233 : vector<32x64xf32>
    %cst_86 = arith.constant 0.000000e+00 : f32
    %235 = vector.broadcast %cst_86 : f32 to vector<32x64xf32>
    %236 = arith.cmpf oge, %234, %235 : vector<32x64xf32>
    %cst_87 = arith.constant 1.000000e+00 : f32
    %cst_88 = arith.constant -1.000000e+00 : f32
    %237 = vector.broadcast %cst_87 : f32 to vector<32x64xf32>
    %238 = vector.broadcast %cst_88 : f32 to vector<32x64xf32>
    %239 = arith.select %236, %237, %238 : vector<32x64xi1>, vector<32x64xf32>
    %240 = math.absf %234 : vector<32x64xf32>
    %cst_89 = arith.constant 0.327591091 : f32
    %241 = vector.broadcast %cst_89 : f32 to vector<32x64xf32>
    %242 = arith.mulf %241, %240 : vector<32x64xf32>
    %cst_90 = arith.constant 1.000000e+00 : f32
    %243 = vector.broadcast %cst_90 : f32 to vector<32x64xf32>
    %244 = arith.addf %243, %242 : vector<32x64xf32>
    %cst_91 = arith.constant 1.000000e+00 : f32
    %245 = vector.broadcast %cst_91 : f32 to vector<32x64xf32>
    %246 = arith.divf %245, %244 : vector<32x64xf32>
    %cst_92 = arith.constant 1.06140542 : f32
    %247 = vector.broadcast %cst_92 : f32 to vector<32x64xf32>
    %248 = arith.mulf %247, %246 : vector<32x64xf32>
    %cst_93 = arith.constant -1.45315206 : f32
    %249 = vector.broadcast %cst_93 : f32 to vector<32x64xf32>
    %250 = arith.addf %248, %249 : vector<32x64xf32>
    %251 = arith.mulf %250, %246 : vector<32x64xf32>
    %cst_94 = arith.constant 1.42141378 : f32
    %252 = vector.broadcast %cst_94 : f32 to vector<32x64xf32>
    %253 = arith.addf %251, %252 : vector<32x64xf32>
    %254 = arith.mulf %253, %246 : vector<32x64xf32>
    %cst_95 = arith.constant -0.284496725 : f32
    %255 = vector.broadcast %cst_95 : f32 to vector<32x64xf32>
    %256 = arith.addf %254, %255 : vector<32x64xf32>
    %257 = arith.mulf %256, %246 : vector<32x64xf32>
    %cst_96 = arith.constant 0.254829586 : f32
    %258 = vector.broadcast %cst_96 : f32 to vector<32x64xf32>
    %259 = arith.addf %257, %258 : vector<32x64xf32>
    %260 = arith.mulf %259, %246 : vector<32x64xf32>
    %cst_97 = arith.constant 0.000000e+00 : f32
    %261 = vector.broadcast %cst_97 : f32 to vector<32x64xf32>
    %262 = arith.subf %261, %240 : vector<32x64xf32>
    %263 = arith.mulf %262, %240 : vector<32x64xf32>
    %264 = math.exp %263 : vector<32x64xf32>
    %265 = arith.mulf %260, %264 : vector<32x64xf32>
    %cst_98 = arith.constant 1.000000e+00 : f32
    %266 = vector.broadcast %cst_98 : f32 to vector<32x64xf32>
    %267 = arith.subf %266, %265 : vector<32x64xf32>
    %268 = arith.mulf %239, %267 : vector<32x64xf32>
    %cst_99 = arith.constant 1.000000e+00 : f32
    %269 = vector.broadcast %cst_99 : f32 to vector<32x64xf32>
    %270 = arith.addf %269, %268 : vector<32x64xf32>
    %271 = arith.mulf %232, %270 : vector<32x64xf32>
    %c120 = arith.constant 120 : index
    %c0_100 = arith.constant 0 : index
    %272 = vector.load %arg2[%c120, %c0_100] : memref<216x128xf32, #tpu.memory_space<vmem>>, vector<64x8xf32>
    %cst_101 = arith.constant dense<0.000000e+00> : vector<32x8xf32>
    %273 = tpu.matmul %271, %272, %cst_101 {dimension_numbers = #tpu.dot_dimension_numbers<[1], [0], [0], [1], [0, 0, 1, 1], [], []>} : vector<32x64xf32>, vector<64x8xf32>, vector<32x8xf32> -> vector<32x8xf32>
    %c204 = arith.constant 204 : index
    %c0_102 = arith.constant 0 : index
    %274 = vector.load %arg2[%c204, %c0_102] : memref<216x128xf32, #tpu.memory_space<vmem>>, vector<1x8xf32>
    %275 = vector.broadcast %274 : vector<1x8xf32> to vector<32x8xf32>
    %276 = arith.addf %273, %275 : vector<32x8xf32>
    %277 = arith.addf %225, %276 : vector<32x8xf32>
    %c207 = arith.constant 207 : index
    %c0_103 = arith.constant 0 : index
    %278 = vector.load %arg2[%c207, %c0_103] : memref<216x128xf32, #tpu.memory_space<vmem>>, vector<1x8xf32>
    %c208 = arith.constant 208 : index
    %c0_104 = arith.constant 0 : index
    %279 = vector.load %arg2[%c208, %c0_104] : memref<216x128xf32, #tpu.memory_space<vmem>>, vector<1x8xf32>
    %cst_105 = arith.constant dense<0.000000e+00> : vector<32xf32>
    %280 = vector.multi_reduction <add>, %277, %cst_105 [1] : vector<32x8xf32> to vector<32xf32>
    %281 = vector.shape_cast %280 : vector<32xf32> to vector<32x1xf32>
    %cst_106 = arith.constant 8.000000e+00 : f32
    %282 = vector.broadcast %cst_106 : f32 to vector<32x1xf32>
    %283 = arith.divf %281, %282 : vector<32x1xf32>
    %284 = vector.broadcast %283 : vector<32x1xf32> to vector<32x8xf32>
    %285 = arith.subf %277, %284 : vector<32x8xf32>
    %286 = vector.broadcast %283 : vector<32x1xf32> to vector<32x8xf32>
    %287 = arith.subf %277, %286 : vector<32x8xf32>
    %288 = arith.mulf %285, %287 : vector<32x8xf32>
    %cst_107 = arith.constant dense<0.000000e+00> : vector<32xf32>
    %289 = vector.multi_reduction <add>, %288, %cst_107 [1] : vector<32x8xf32> to vector<32xf32>
    %290 = vector.shape_cast %289 : vector<32xf32> to vector<32x1xf32>
    %cst_108 = arith.constant 8.000000e+00 : f32
    %291 = vector.broadcast %cst_108 : f32 to vector<32x1xf32>
    %292 = arith.divf %290, %291 : vector<32x1xf32>
    %293 = vector.broadcast %283 : vector<32x1xf32> to vector<32x8xf32>
    %294 = arith.subf %277, %293 : vector<32x8xf32>
    %cst_109 = arith.constant 9.99999974E-6 : f32
    %295 = vector.broadcast %cst_109 : f32 to vector<32x1xf32>
    %296 = arith.addf %292, %295 : vector<32x1xf32>
    %297 = math.rsqrt %296 : vector<32x1xf32>
    %298 = vector.broadcast %297 : vector<32x1xf32> to vector<32x8xf32>
    %299 = arith.mulf %294, %298 : vector<32x8xf32>
    %300 = vector.broadcast %278 : vector<1x8xf32> to vector<32x8xf32>
    %301 = arith.mulf %299, %300 : vector<32x8xf32>
    %302 = vector.broadcast %279 : vector<1x8xf32> to vector<32x8xf32>
    %303 = arith.addf %301, %302 : vector<32x8xf32>
    %c209 = arith.constant 209 : index
    %c0_110 = arith.constant 0 : index
    %304 = vector.load %arg2[%c209, %c0_110] : memref<216x128xf32, #tpu.memory_space<vmem>>, vector<1x8xf32>
    %c210 = arith.constant 210 : index
    %c0_111 = arith.constant 0 : index
    %305 = vector.load %arg2[%c210, %c0_111] : memref<216x128xf32, #tpu.memory_space<vmem>>, vector<1x8xf32>
    %cst_112 = arith.constant dense<0.000000e+00> : vector<32xf32>
    %306 = vector.multi_reduction <add>, %303, %cst_112 [1] : vector<32x8xf32> to vector<32xf32>
    %307 = vector.shape_cast %306 : vector<32xf32> to vector<32x1xf32>
    %cst_113 = arith.constant 8.000000e+00 : f32
    %308 = vector.broadcast %cst_113 : f32 to vector<32x1xf32>
    %309 = arith.divf %307, %308 : vector<32x1xf32>
    %310 = vector.broadcast %309 : vector<32x1xf32> to vector<32x8xf32>
    %311 = arith.subf %303, %310 : vector<32x8xf32>
    %312 = vector.broadcast %309 : vector<32x1xf32> to vector<32x8xf32>
    %313 = arith.subf %303, %312 : vector<32x8xf32>
    %314 = arith.mulf %311, %313 : vector<32x8xf32>
    %cst_114 = arith.constant dense<0.000000e+00> : vector<32xf32>
    %315 = vector.multi_reduction <add>, %314, %cst_114 [1] : vector<32x8xf32> to vector<32xf32>
    %316 = vector.shape_cast %315 : vector<32xf32> to vector<32x1xf32>
    %cst_115 = arith.constant 8.000000e+00 : f32
    %317 = vector.broadcast %cst_115 : f32 to vector<32x1xf32>
    %318 = arith.divf %316, %317 : vector<32x1xf32>
    %319 = vector.broadcast %309 : vector<32x1xf32> to vector<32x8xf32>
    %320 = arith.subf %303, %319 : vector<32x8xf32>
    %cst_116 = arith.constant 9.99999974E-6 : f32
    %321 = vector.broadcast %cst_116 : f32 to vector<32x1xf32>
    %322 = arith.addf %318, %321 : vector<32x1xf32>
    %323 = math.rsqrt %322 : vector<32x1xf32>
    %324 = vector.broadcast %323 : vector<32x1xf32> to vector<32x8xf32>
    %325 = arith.mulf %320, %324 : vector<32x8xf32>
    %326 = vector.broadcast %304 : vector<1x8xf32> to vector<32x8xf32>
    %327 = arith.mulf %325, %326 : vector<32x8xf32>
    %328 = vector.broadcast %305 : vector<1x8xf32> to vector<32x8xf32>
    %329 = arith.addf %327, %328 : vector<32x8xf32>
    %330 = vector.extract_strided_slice %329 {offsets = [15, 0], sizes = [1, 8], strides = [1, 1]} : vector<32x8xf32> to vector<1x8xf32>
    %331 = vector.extract_strided_slice %329 {offsets = [31, 0], sizes = [1, 8], strides = [1, 1]} : vector<32x8xf32> to vector<1x8xf32>
    %332 = tpu.concatenate %330, %331 in 0 : vector<1x8xf32>, vector<1x8xf32> -> vector<2x8xf32>
    %c184 = arith.constant 184 : index
    %c0_117 = arith.constant 0 : index
    %333 = vector.load %arg2[%c184, %c0_117] : memref<216x128xf32, #tpu.memory_space<vmem>>, vector<8x128xf32>
    %cst_118 = arith.constant dense<0.000000e+00> : vector<2x128xf32>
    %334 = tpu.matmul %332, %333, %cst_118 {dimension_numbers = #tpu.dot_dimension_numbers<[1], [0], [0], [1], [0, 0, 1, 1], [], []>} : vector<2x8xf32>, vector<8x128xf32>, vector<2x128xf32> -> vector<2x128xf32>
    %c211 = arith.constant 211 : index
    %c0_119 = arith.constant 0 : index
    %335 = vector.load %arg2[%c211, %c0_119] : memref<216x128xf32, #tpu.memory_space<vmem>>, vector<1x128xf32>
    %336 = vector.broadcast %335 : vector<1x128xf32> to vector<2x128xf32>
    %337 = arith.addf %334, %336 : vector<2x128xf32>
    %c0_120 = arith.constant 0 : index
    %c0_121 = arith.constant 0 : index
    %338 = vector.load %arg3[%c0_120, %c0_121] : memref<2x128xf32, #tpu.memory_space<vmem>>, vector<2x128xf32>
    tpu.vector_store %arg3[%c0_120, %c0_121], %337 {strides = array<i32>} : memref<2x128xf32, #tpu.memory_space<vmem>>, vector<2x128xf32>,
    return
  }
}

</mosaic_0001>

<bundles_post_ra>
// kernel: tpu_custom_call.1
= control target key start
LH: loop header
LB: loop body
LE: loop exit
PB: predicated region body
PF: predicated region fallthrough
CT: control target
= control target key end

     0   :  { %8 = vsyncpa [#allocation3], 0  ;;  %s4055_s0 = inlined_call_operand.vmem [shape: f32[32,4], index: 0, kind: input, shape index: {}]   ;;  %s4056_s1 = inlined_call_operand.hbm [shape: f32[2,32,32], index: 1, kind: input, shape index: {}]   ;;  %s4057_s2 = inlined_call_operand.hbm [shape: f32[216,128], index: 2, kind: input, shape index: {}]   ;;  %s4058_s3 = inlined_call_operand.hbm [shape: f32[2,128], index: 3, kind: output, shape index: {}]  }
   0x1   :  { %9 = vsyncpa [#allocation6], 0 }
   0x2   :  { %10 = vsyncpa [#allocation4], 0  ;;  %s3527_s12 = smov [#allocation2]  }
   0x3   :  { %s18_s13 = sshll.u32 %s3527_s12, 4  ;;  %s19_s13 = int_to_ptr.vmem [resolvable:$true] %s18_s13 }
   0x4   :  { %s3469_s14 = scalar_lea.vmem %s19_s13, 1024  ;;  %p3474_p1 = scmp.lt.s32.totalorder %s19_s13, %s19_s13 }
   0x5   :  { %p3470_p0 = scmp.ne.s32.totalorder %s19_s13, %s3469_s14  ;;  %p3475_p2 = scmp.lt.s32.totalorder %s3469_s14, %s3469_s14 }
   0x7   :  { %p3476_p3 = por %p3475_p2, %p3474_p1 }
   0x9   :  { %p3477_p4 = pnand %p3476_p3, %p3470_p0 }
   0xb   :  { %3480 = shalt.err (!%p3477_p4)
}
   0xc   :  { %s3528_s15 = smov 128   ;;  %s3529_s16 = smov 8  }
   0xd   :  { %24 = dma.hbm_to_vmem [thread:$0]  %s4056_s1, 1024, %s19_s13, [#allocation3], %s3528_s15, %s3528_s15, %s3529_s16  }
   0xe   :  { %s3530_s19 = smov [#allocation5]  }
   0xf   :  { %s30_s20 = sshll.u32 %s3530_s19, 4  ;;  %s31_s20 = int_to_ptr.vmem [resolvable:$true] %s30_s20 }
  0x10   :  { %s3489_s21 = scalar_lea.vmem %s31_s20, 3456  ;;  %p3494_p6 = scmp.lt.s32.totalorder %s31_s20, %s31_s20 }
  0x11   :  { %p3490_p5 = scmp.ne.s32.totalorder %s31_s20, %s3489_s21  ;;  %p3495_p7 = scmp.lt.s32.totalorder %s3489_s21, %s3489_s21 }
  0x13   :  { %p3496_p8 = por %p3495_p7, %p3494_p6 }
  0x15   :  { %p3497_p9 = pnand %p3496_p8, %p3490_p5 }
  0x17   :  { %3500 = shalt.err (!%p3497_p9)
}
  0x18   :  { %36 = dma.hbm_to_vmem [thread:$0]  %s4057_s2, 3456, %s31_s20, [#allocation6], %s3528_s15, %s3528_s15, %s3529_s16  }
  0x19   :  { %3521 = dma.done.wait [#allocation3], 1024  }
  0x1a   :  { %3522 = vsyncadd [#allocation3], 4294966272 }
  0x1b   :  { %3523 = dma.done.wait [#allocation6], 3456  }
  0x1c   :  { %3524 = vsyncadd [#allocation6], 4294963840  ;;  %vm75_vm0 = vcmask 1043456   ;;  %vm62_vm1 = vcmask 31744   ;;  %v56_v0 = vld [vmem:[#allocation5] sm:$0xf] }
  0x1d   :  { %v43_v1 = vld [vmem:[%s4055_s0] sm:$0xff]  ;;  %v44_v2 = vld [vmem:[%s4055_s0 + $0x8] sm:$0xff]  ;;  %3084 = vmatprep.subr.msk.mxu1 %vm75_vm0, %v56_v0  ;;  %v45_v3 = vld [vmem:[%s4055_s0 + $0x10] sm:$0xff]  ;;  %vm164_vm2 = vcmask 261120   ;;  %vm272_vm3 = vcmask 64512   ;;  %s3532_s30 = smov 112  }
  0x1e   :  { %3086 = vmatprep.mubr.msk.f32.mxu1 %vm62_vm1, %v43_v1  ;;  %3085 = vmatpush3.msk.msra.mxu1 %vm75_vm0, %v56_v0  ;;  %v46_v4 = vld [vmem:[%s4055_s0 + $0x18] sm:$0xff]  ;;  %v47_v5 = vld [vmem:[#allocation2] sm:$0xff]  ;;  %v48_v15 = vld [vmem:[#allocation2 + $0x8] sm:$0xff]  ;;  %s3531_s0 = smov 120   ;;  %s3533_s4 = smov 116   ;;  %vm1328_vm6 = vcmask 523264  }
  0x1f   :  { %3087 = vmatmul.mubr.msk.f32.vlgmr.msra.gmra.mxu1 %vm62_vm1, %v44_v2  ;;  %v2841_v8 = vld [vmem:[#allocation5 + $0xc0] ss:$0 sm:$0xff]  ;;  %v49_v16 = vld [vmem:[#allocation2 + $0x10] sm:$0xff]  ;;  %v50_v17 = vld [vmem:[#allocation2 + $0x18] sm:$0xff]  ;;  %s3534_s5 = smov 124   ;;  %s3535_s6 = smov 108  }
  0x20   :  { %3089 = vmatprep.mubr.msk.f32.mxu1 %vm62_vm1, %v45_v3  ;;  %v266_v18 = vld [vmem:[#allocation5 + $0x8] sm:$0xff]  ;;  %v2851_v27 = vld [vmem:[#allocation5 + $0xc1] ss:$0 sm:$0xff]  ;;  %v3648_v49 = vld [vmem:[#allocation2 + $0x38] sm:$0xff]  ;;  %s3536_s7 = smov 4   ;;  %vm3539_vm13 = vmmov 0  }
  0x21   :  { %3106 = vmatprep.subr.mxu0 %v266_v18  ;;  %v3643_v44 = vld [vmem:[#allocation2 + $0x28] sm:$0xff]  ;;  %v3645_v46 = vld [vmem:[#allocation2 + $0x20] sm:$0xff]  ;;  %v3654_v56 = vld [vmem:[#allocation2 + $0x30] sm:$0xff]  ;;  %vm2743_vm14 = vcmask 1040384   ;;  %s3540_s8 = smov [#allocation7]  }
  0x22   :  { %3107 = vmatpush3.msra.mxu0 %v266_v18  ;;  %s2831_s9 = sshll.u32 %s3540_s8, 4  ;;  %s2832_s9 = int_to_ptr.vmem [resolvable:$true] %s2831_s9 }
  0x23   :  { %3090 = vmatmul.mubr.msk.f32.gmra.mxu1 %vm62_vm1, %v46_v4  ;;  %s3501_s10 = scalar_lea.vmem %s2832_s9, 32  ;;  %p3506_p11 = scmp.lt.s32.totalorder %s2832_s9, %s2832_s9 }
  0x24   :  { %3100 = vmatprep.mubr.msk.f32.mxu1 %vm164_vm2, %v47_v5  ;;  %p3502_p10 = scmp.ne.s32.totalorder %s2832_s9, %s3501_s10  ;;  %p3507_p12 = scmp.lt.s32.totalorder %s3501_s10, %s3501_s10 }
  0x26   :  { %p3508_p13 = por %p3507_p12, %p3506_p11 }
  0x28   :  { %p3509_p0 = pnand %p3508_p13, %p3502_p10 }
  0xdf   :  { %v3088_v6 = vpop.f32.mrf.mxu1 }
  0xe0   :  { %v151_v13 = vadd.f32 %v3088_v6, %v2841_v8 }
  0xe1   :  { %v145_v7 = vpop.f32.mrf.mxu1 }
  0xe2   :  { %v146_v14 = vadd.f32 %v2841_v8, %v145_v7 }
  0xe3   :  { %v3091_v9 = vpop.f32.mrf.mxu1 }
  0xe4   :  { %v161_v10 = vadd.f32 %v3091_v9, %v2841_v8 }
  0xe5   :  { %v155_v11 = vpop.f32.mrf.mxu1 }
  0xe6   :  { %v156_v12 = vadd.f32 %v2841_v8, %v155_v11  ;;  %3092 = vmatprep.subr.mxu1 %v161_v10 }
  0xe7   :  { %3093 = vmatpush3.msra.mxu1 %v161_v10 }
  0xe8   :  { %3094 = vmatprep.subr.mxu1 %v156_v12 }
  0xe9   :  { %3095 = vmatpush3.msra.mxu1 %v156_v12 }
  0xea   :  { %3096 = vmatprep.subr.mxu1 %v151_v13 }
  0xeb   :  { %3097 = vmatpush3.msra.mxu1 %v151_v13 }
  0xec   :  { %3098 = vmatprep.subr.mxu1 %v146_v14 }
  0xed   :  { %3099 = vmatpush3.msra.mxu1 %v146_v14 }
  0xee   :  { %3101 = vmatmul.mubr.msk.f32.vlgmr.msra.gmra.mxu1 %vm164_vm2, %v48_v15 }
  0xef   :  { %3103 = vmatprep.mubr.msk.f32.mxu1 %vm164_vm2, %v49_v16 }
  0xf2   :  { %3104 = vmatmul.mubr.msk.f32.gmra.mxu1 %vm164_vm2, %v50_v17 }
 0x1ae   :  { %v3102_v19 = vpop.f32.mrf.mxu1 }
 0x1af   :  { %v3589_v22 = vsub.f32 %v151_v13, %v3102_v19 }
 0x1b0   :  { %v243_v20 = vpop.f32.mrf.mxu1 }
 0x1b1   :  { %v3587_v21 = vsub.f32 %v146_v14, %v243_v20 }
 0x1b2   :  { %v3105_v23 = vpop.f32.mrf.mxu1 }
 0x1b3   :  { %3108 = vmatprep.mubr.msk.f32.mxu0 %vm272_vm3, %v3587_v21  ;;  %v3597_v26 = vsub.f32 %v161_v10, %v3105_v23 }
 0x1b4   :  { %v253_v24 = vpop.f32.mrf.mxu1  ;;  %3109 = vmatmul.mubr.msk.f32.vlgmr.msra.gmra.mxu0 %vm272_vm3, %v3589_v22 }
 0x1b5   :  { %v3595_v25 = vsub.f32 %v156_v12, %v253_v24 }
 0x1b7   :  { %3111 = vmatprep.mubr.msk.f32.mxu0 %vm272_vm3, %v3595_v25 }
 0x1b8   :  { %3112 = vmatmul.mubr.msk.f32.gmra.mxu0 %vm272_vm3, %v3597_v26 }
 0x274   :  { %v3110_v28 = vpop.f32.mrf.mxu0 }
 0x275   :  { %v3603_v29 = vadd.f32 %v3110_v28, %v2851_v27 }
 0x276   :  { %v351_v30 = vpop.f32.mrf.mxu0 }
 0x277   :  { %v3605_v31 = vadd.f32 %v2851_v27, %v351_v30  ;;  %376 = vrot.lane.b32.xlu1 %v3603_v29, %s3531_s0 }
 0x278   :  { %v3113_v32 = vpop.f32.mrf.mxu0 }
 0x279   :  { %v3609_v33 = vadd.f32 %v3113_v32, %v2851_v27  ;;  %3122 = vmatprep.mubr.msk.f32.mxu1 %vm62_vm1, %v3605_v31 }
 0x27a   :  { %v361_v34 = vpop.f32.mrf.mxu0 }
 0x27b   :  { %374 = vrot.lane.b32.xlu1 %v3605_v31, %s3531_s0  ;;  %380 = vrot.lane.b32.xlu0 %v3609_v33, %s3531_s0  ;;  %v3617_v35 = vadd.f32 %v2851_v27, %v361_v34 }
 0x27f   :  { %533 = vrot.lane.b32.xlu1 %v3609_v33, %s3532_s30  ;;  %378 = vrot.lane.b32.xlu0 %v3617_v35, %s3531_s0 }
 0x283   :  { %529 = vrot.lane.b32.xlu1 %v3603_v29, %s3532_s30  ;;  %531 = vrot.lane.b32.xlu0 %v3617_v35, %s3532_s30 }
 0x287   :  { %527 = vrot.lane.b32.xlu1 %v3605_v31, %s3532_s30 }
 0x2e9   :  { %v377_v36 = vpop.permute.xlu1 %376 }
 0x2ed   :  { %v375_v37 = vpop.permute.xlu1 %374  ;;  %v381_v38 = vpop.permute.xlu0 %380 }
 0x2ee   :  { %3114 = vmatprep.subr.msk.mxu1 %vm62_vm1, %v381_v38 }
 0x2ef   :  { %3115 = vmatpush3.xpose.msk.msra.mxu1 %vm62_vm1, %v381_v38 }
 0x2f1   :  { %v534_v39 = vpop.permute.xlu1 %533  ;;  %v379_v40 = vpop.permute.xlu0 %378 }
 0x2f2   :  { %3116 = vmatprep.subr.msk.mxu1 %vm62_vm1, %v379_v40  ;;  %3128 = vmatprep.subr.mxu0 %v534_v39 }
 0x2f3   :  { %3117 = vmatpush3.xpose.msk.msra.mxu1 %vm62_vm1, %v379_v40  ;;  %3129 = vmatpush3.msra.mxu0 %v534_v39 }
 0x2f4   :  { %3118 = vmatprep.subr.msk.mxu1 %vm62_vm1, %v377_v36 }
 0x2f5   :  { %v530_v41 = vpop.permute.xlu1 %529  ;;  %v532_v42 = vpop.permute.xlu0 %531 }
 0x2f6   :  { %3130 = vmatprep.subr.mxu0 %v532_v42 }
 0x2f7   :  { %3119 = vmatpush3.xpose.msk.msra.mxu1 %vm62_vm1, %v377_v36  ;;  %3131 = vmatpush3.msra.mxu0 %v532_v42 }
 0x2f8   :  { %3120 = vmatprep.subr.msk.mxu1 %vm62_vm1, %v375_v37  ;;  %3132 = vmatprep.subr.mxu0 %v530_v41 }
 0x2f9   :  { %v528_v43 = vpop.permute.xlu1 %527  ;;  %3133 = vmatpush3.msra.mxu0 %v530_v41 }
 0x2fa   :  { %3134 = vmatprep.subr.mxu0 %v528_v43 }
 0x2fb   :  { %3121 = vmatpush3.xpose.msk.msra.mxu1 %vm62_vm1, %v375_v37  ;;  %3135 = vmatpush3.msra.mxu0 %v528_v43 }
 0x2fe   :  { %3123 = vmatmul.mubr.msk.f32.vlgmr.msra.gmra.mxu1 %vm62_vm1, %v3603_v29 }
 0x2ff   :  { %3125 = vmatprep.mubr.msk.f32.mxu1 %vm62_vm1, %v3617_v35 }
 0x302   :  { %3126 = vmatmul.mubr.msk.f32.gmra.mxu1 %vm62_vm1, %v3609_v33 }
 0x3be   :  { %v3124_v45 = vpop.f32.mrf.mxu1 }
 0x3bf   :  { %v470_v47 = vadd.f32 %v3124_v45, %v3643_v44 }
 0x3c0   :  { %v464_v48 = vpop.f32.mrf.mxu1 }
 0x3c1   :  { %v465_v50 = vadd.f32 %v464_v48, %v3645_v46  ;;  %v486_v51 = vsel %vm164_vm2, %v470_v47, -inf }
 0x3c2   :  { %487 = vmax.xlane.f32.xlu1 %v486_v51  ;;  %v3127_v52 = vpop.f32.mrf.mxu1 }
 0x3c3   :  { %v480_v53 = vadd.f32 %v3127_v52, %v3648_v49  ;;  %v483_v54 = vsel %vm164_vm2, %v465_v50, -inf }
 0x3c4   :  { %v474_v55 = vpop.f32.mrf.mxu1  ;;  %484 = vmax.xlane.f32.xlu0 %v483_v54 }
 0x3c5   :  { %v475_v57 = vadd.f32 %v474_v55, %v3654_v56  ;;  %v492_v58 = vsel %vm164_vm2, %v480_v53, -inf }
 0x3c7   :  { %v489_v59 = vsel %vm164_vm2, %v475_v57, -inf }
 0x3c8   :  { %493 = vmax.xlane.f32.xlu0 %v492_v58 }
 0x3cc   :  { %490 = vmax.xlane.f32.xlu0 %v489_v59 }
 0x3d3   :  { %648 = vrot.lane.b32.xlu1 %v3617_v35, %s3533_s4 }
 0x3e2   :  { %650 = vrot.lane.b32.xlu0 %v3609_v33, %s3533_s4 }
 0x44b   :  { %v488_v60 = vpop.xlane.xlu1 %487 }
 0x44c   :  { %v496_v61 = vsub.f32 %v470_v47, %v488_v60 }
 0x44d   :  { %v485_v62 = vpop.xlane.xlu0 %484 }
 0x44e   :  { %v501_v63 = vmul.f32 1.442695, %v496_v61  ;;  %v495_v0 = vsub.f32 %v465_v50, %v485_v62 }
 0x44f   :  { %v649_v17 = vpop.permute.xlu1 %648 }
 0x450   :  { %3329 = vpow2.f32 %v501_v63  ;;  %v499_v1 = vmul.f32 1.442695, %v495_v0 }
 0x451   :  { %v494_v2 = vpop.xlane.xlu0 %493 }
 0x452   :  { %3331 = vpow2.f32 %v499_v1  ;;  %v498_v9 = vsub.f32 %v480_v53, %v494_v2 }
 0x454   :  { %v505_v11 = vmul.f32 1.442695, %v498_v9 }
 0x455   :  { %v491_v3 = vpop.xlane.xlu0 %490 }
 0x456   :  { %v497_v10 = vsub.f32 %v475_v57, %v491_v3  ;;  %3333 = vpow2.f32 %v505_v11 }
 0x458   :  { %v503_v12 = vmul.f32 1.442695, %v497_v10 }
 0x459   :  { %v651_v4 = vpop.permute.xlu0 %650 }
 0x45a   :  { %3142 = vmatprep.subr.msk.mxu0 %vm62_vm1, %v651_v4  ;;  %3335 = vpow2.f32 %v503_v12 }
 0x45d   :  { %v3330_v5 = vpop.eup %3329 }
 0x45e   :  { %v510_v6 = vsel %vm164_vm2, %v3330_v5, 0.0 }
 0x45f   :  { %v3332_v7 = vpop.eup %3331  ;;  %511 = vadd.xlane.f32.xlu0 %v510_v6 }
 0x460   :  { %v507_v8 = vsel %vm164_vm2, %v3332_v7, 0.0 }
 0x461   :  { %508 = vadd.xlane.f32.xlu1 %v507_v8 }
 0x463   :  { %v3334_v13 = vpop.eup %3333 }
 0x464   :  { %v516_v15 = vsel %vm164_vm2, %v3334_v13, 0.0 }
 0x467   :  { %v3336_v14 = vpop.eup %3335 }
 0x468   :  { %v513_v16 = vsel %vm164_vm2, %v3336_v14, 0.0 }
 0x472   :  { %644 = vrot.lane.b32.xlu1 %v3605_v31, %s3533_s4 }
 0x475   :  { %646 = vrot.lane.b32.xlu0 %v3603_v29, %s3533_s4 }
 0x494   :  { %517 = vadd.xlane.f32.xlu0 %v516_v15 }
 0x496   :  { %514 = vadd.xlane.f32.xlu1 %v513_v16 }
 0x4a7   :  { %638 = vrot.lane.b32.xlu1 %v3603_v29, %s3534_s5 }
 0x4aa   :  { %636 = vrot.lane.b32.xlu0 %v3605_v31, %s3534_s5 }
 0x4ab   :  { %642 = vrot.lane.b32.xlu1 %v3609_v33, %s3534_s5 }
 0x4ae   :  { %640 = vrot.lane.b32.xlu0 %v3617_v35, %s3534_s5 }
 0x4e8   :  { %v512_v18 = vpop.xlane.xlu0 %511 }
 0x4e9   :  { %3337 = vrcp.f32 %v512_v18 }
 0x4ea   :  { %v509_v19 = vpop.xlane.xlu1 %508 }
 0x4eb   :  { %3339 = vrcp.f32 %v509_v19 }
 0x4ec   :  { %v647_v28 = vpop.permute.xlu0 %646 }
 0x4ee   :  { %v645_v30 = vpop.permute.xlu1 %644 }
 0x4f6   :  { %v3338_v20 = vpop.eup %3337 }
 0x4f7   :  { %v522_v27 = vmul.f32 %v3338_v20, %v3330_v5 }
 0x4f8   :  { %v3340_v23 = vpop.eup %3339 }
 0x4f9   :  { %v520_v24 = vmul.f32 %v3340_v23, %v3332_v7 }
 0x4fb   :  { %3136 = vmatprep.mubr.msk.f32.mxu0 %vm164_vm2, %v520_v24 }
 0x4fc   :  { %3137 = vmatmul.mubr.msk.f32.vlgmr.msra.gmra.mxu0 %vm164_vm2, %v522_v27 }
 0x4fd   :  { %3143 = vmatpush3.xpose.msk.msra.mxu0 %vm62_vm1, %v651_v4 }
 0x4fe   :  { %3144 = vmatprep.subr.msk.mxu0 %vm62_vm1, %v649_v17 }
 0x501   :  { %3145 = vmatpush3.xpose.msk.msra.mxu0 %vm62_vm1, %v649_v17 }
 0x502   :  { %3146 = vmatprep.subr.msk.mxu0 %vm62_vm1, %v647_v28 }
 0x505   :  { %3147 = vmatpush3.xpose.msk.msra.mxu0 %vm62_vm1, %v647_v28 }
 0x506   :  { %3148 = vmatprep.subr.msk.mxu0 %vm62_vm1, %v645_v30 }
 0x509   :  { %3149 = vmatpush3.xpose.msk.msra.mxu0 %vm62_vm1, %v645_v30 }
 0x51d   :  { %v518_v32 = vpop.xlane.xlu0 %517 }
 0x51e   :  { %3341 = vrcp.f32 %v518_v32 }
 0x51f   :  { %v515_v34 = vpop.xlane.xlu1 %514 }
 0x520   :  { %3343 = vrcp.f32 %v515_v34 }
 0x521   :  { %v637_v39 = vpop.permute.xlu0 %636 }
 0x523   :  { %v639_v41 = vpop.permute.xlu1 %638 }
 0x525   :  { %v641_v42 = vpop.permute.xlu0 %640 }
 0x527   :  { %v643_v43 = vpop.permute.xlu1 %642 }
 0x52b   :  { %v3342_v36 = vpop.eup %3341 }
 0x52c   :  { %v526_v40 = vmul.f32 %v3342_v36, %v3334_v13  ;;  %v926_v36 = vld [vmem:[#allocation5 + $0x10] sm:$0xff] }
 0x52d   :  { %v3344_v37 = vpop.eup %3343 }
 0x52e   :  { %v524_v38 = vmul.f32 %v3344_v37, %v3336_v14 }
 0x530   :  { %3139 = vmatprep.mubr.msk.f32.mxu0 %vm164_vm2, %v524_v38 }
 0x531   :  { %3140 = vmatmul.mubr.msk.f32.gmra.mxu0 %vm164_vm2, %v526_v40 }
 0x532   :  { %3150 = vmatprep.mubr.msk.f32.mxu0 %vm62_vm1, %v637_v39 }
 0x535   :  { %3151 = vmatmul.mubr.msk.f32.vlgmr.msra.gmra.mxu0 %vm62_vm1, %v639_v41 }
 0x536   :  { %3153 = vmatprep.mubr.msk.f32.mxu0 %vm62_vm1, %v641_v42 }
 0x539   :  { %3154 = vmatmul.mubr.msk.f32.gmra.mxu0 %vm62_vm1, %v643_v43 }
 0x5bc   :  { %v3695_v45 = vpop.f32.mrf.mxu0 }
 0x5be   :  { %v3697_v47 = vpop.f32.mrf.mxu0 }
 0x5f1   :  { %v3699_v48 = vpop.f32.mrf.mxu0 }
 0x5f3   :  { %v3701_v50 = vpop.f32.mrf.mxu0 }
 0x5f5   :  { %v3152_v51 = vpop.f32.mrf.mxu0 }
 0x5f6   :  { %v740_v52 = vadd.f32 %v3152_v51, %v3643_v44 }
 0x5f7   :  { %v734_v53 = vpop.f32.mrf.mxu0 }
 0x5f8   :  { %v735_v54 = vadd.f32 %v734_v53, %v3645_v46  ;;  %v756_v55 = vsel %vm164_vm2, %v740_v52, -inf }
 0x5f9   :  { %757 = vmax.xlane.f32.xlu1 %v756_v55  ;;  %v3155_v57 = vpop.f32.mrf.mxu0 }
 0x5fa   :  { %v753_v58 = vsel %vm164_vm2, %v735_v54, -inf  ;;  %v750_v61 = vadd.f32 %v3155_v57, %v3648_v49 }
 0x5fb   :  { %754 = vmax.xlane.f32.xlu0 %v753_v58  ;;  %v744_v59 = vpop.f32.mrf.mxu0 }
 0x5fc   :  { %v745_v60 = vadd.f32 %v744_v59, %v3654_v56  ;;  %v762_v44 = vsel %vm164_vm2, %v750_v61, -inf }
 0x5fe   :  { %v759_v62 = vsel %vm164_vm2, %v745_v60, -inf }
 0x5ff   :  { %760 = vmax.xlane.f32.xlu0 %v759_v62 }
 0x603   :  { %763 = vmax.xlane.f32.xlu0 %v762_v44 }
 0x60a   :  { %803 = vrot.lane.b32.xlu1 %v3609_v33, %s3535_s6 }
 0x682   :  { %v758_v46 = vpop.xlane.xlu1 %757 }
 0x683   :  { %v766_v63 = vsub.f32 %v740_v52, %v758_v46 }
 0x684   :  { %v755_v0 = vpop.xlane.xlu0 %754 }
 0x685   :  { %v771_v1 = vmul.f32 1.442695, %v766_v63  ;;  %v765_v2 = vsub.f32 %v735_v54, %v755_v0 }
 0x686   :  { %v804_v3 = vpop.permute.xlu1 %803 }
 0x687   :  { %3345 = vpow2.f32 %v771_v1  ;;  %v769_v56 = vmul.f32 1.442695, %v765_v2  ;;  %3156 = vmatprep.subr.mxu1 %v804_v3 }
 0x688   :  { %3157 = vmatpush3.msra.mxu1 %v804_v3  ;;  %v761_v49 = vpop.xlane.xlu0 %760 }
 0x689   :  { %3347 = vpow2.f32 %v769_v56  ;;  %v767_v12 = vsub.f32 %v745_v60, %v761_v49 }
 0x68b   :  { %v773_v13 = vmul.f32 1.442695, %v767_v12 }
 0x68c   :  { %v764_v4 = vpop.xlane.xlu0 %763 }
 0x68d   :  { %v768_v5 = vsub.f32 %v750_v61, %v764_v4 }
 0x68f   :  { %v775_v6 = vmul.f32 1.442695, %v768_v5 }
 0x691   :  { %3349 = vpow2.f32 %v775_v6 }
 0x692   :  { %3351 = vpow2.f32 %v773_v13 }
 0x694   :  { %v3346_v7 = vpop.eup %3345 }
 0x695   :  { %v780_v8 = vsel %vm164_vm2, %v3346_v7, 0.0 }
 0x696   :  { %v3348_v33 = vpop.eup %3347  ;;  %781 = vadd.xlane.f32.xlu0 %v780_v8 }
 0x697   :  { %v777_v9 = vsel %vm164_vm2, %v3348_v33, 0.0 }
 0x698   :  { %778 = vadd.xlane.f32.xlu1 %v777_v9 }
 0x69e   :  { %v3350_v10 = vpop.eup %3349 }
 0x69f   :  { %v786_v11 = vsel %vm164_vm2, %v3350_v10, 0.0  ;;  %v3352_v14 = vpop.eup %3351 }
 0x6a0   :  { %787 = vadd.xlane.f32.xlu0 %v786_v11  ;;  %v783_v15 = vsel %vm164_vm2, %v3352_v14, 0.0 }
 0x6a9   :  { %799 = vrot.lane.b32.xlu1 %v3603_v29, %s3535_s6 }
 0x6b6   :  { %801 = vrot.lane.b32.xlu0 %v3617_v35, %s3535_s6 }
 0x6cd   :  { %784 = vadd.xlane.f32.xlu1 %v783_v15 }
 0x6de   :  { %797 = vrot.lane.b32.xlu1 %v3605_v31, %s3535_s6 }
 0x71f   :  { %v782_v17 = vpop.xlane.xlu0 %781 }
 0x721   :  { %v779_v16 = vpop.xlane.xlu1 %778 }
 0x722   :  { %3353 = vrcp.f32 %v779_v16 }
 0x723   :  { %3355 = vrcp.f32 %v782_v17  ;;  %v1104_v17 = vld [vmem:[#allocation5 + $0x18] sm:$0xff] }
 0x724   :  { %3178 = vmatprep.subr.mxu0 %v1104_v17 }
 0x725   :  { %v800_v20 = vpop.permute.xlu1 %799  ;;  %3179 = vmatpush3.msra.mxu0 %v1104_v17 }
 0x729   :  { %v788_v18 = vpop.xlane.xlu0 %787 }
 0x72a   :  { %3357 = vrcp.f32 %v788_v18 }
 0x72d   :  { %v802_v19 = vpop.permute.xlu0 %801 }
 0x72e   :  { %3158 = vmatprep.subr.mxu1 %v802_v19 }
 0x72f   :  { %v3354_v29 = vpop.eup %3353  ;;  %3159 = vmatpush3.msra.mxu1 %v802_v19 }
 0x730   :  { %3160 = vmatprep.subr.mxu1 %v800_v20  ;;  %v790_v35 = vmul.f32 %v3354_v29, %v3348_v33  ;;  %v3356_v24 = vpop.eup %3355 }
 0x731   :  { %3161 = vmatpush3.msra.mxu1 %v800_v20  ;;  %v792_v27 = vmul.f32 %v3356_v24, %v3346_v7 }
 0x732   :  { %3164 = vmatprep.mubr.msk.f32.mxu1 %vm164_vm2, %v790_v35 }
 0x737   :  { %v3358_v28 = vpop.eup %3357 }
 0x738   :  { %v796_v34 = vmul.f32 %v3358_v28, %v3350_v10 }
 0x756   :  { %v785_v23 = vpop.xlane.xlu1 %784 }
 0x757   :  { %3359 = vrcp.f32 %v785_v23 }
 0x75a   :  { %v798_v31 = vpop.permute.xlu1 %797 }
 0x75b   :  { %3162 = vmatprep.subr.mxu1 %v798_v31 }
 0x75c   :  { %3163 = vmatpush3.msra.mxu1 %v798_v31 }
 0x75d   :  { %3165 = vmatmul.mubr.msk.f32.vlgmr.msra.gmra.mxu1 %vm164_vm2, %v792_v27  ;;  %3170 = vmatprep.subr.mxu1 %v926_v36 }
 0x75e   :  { %3171 = vmatpush3.msra.mxu1 %v926_v36  ;;  %v2885_v36 = vld [vmem:[#allocation5 + $0xc5] ss:$0 sm:$0xff] }
 0x764   :  { %v3360_v30 = vpop.eup %3359 }
 0x765   :  { %v794_v32 = vmul.f32 %v3360_v30, %v3352_v14 }
 0x767   :  { %3167 = vmatprep.mubr.msk.f32.mxu1 %vm164_vm2, %v794_v32 }
 0x768   :  { %3168 = vmatmul.mubr.msk.f32.gmra.mxu1 %vm164_vm2, %v796_v34 }
 0x81d   :  { %v3166_v37 = vpop.f32.mrf.mxu1 }
 0x81e   :  { %912 = vrot.lane.b32.xlu1 %v3166_v37, %s3536_s7 }
 0x81f   :  { %v887_v38 = vpop.f32.mrf.mxu1 }
 0x820   :  { %910 = vrot.lane.b32.xlu0 %v887_v38, %s3536_s7 }
 0x828   :  { %v3169_v39 = vpop.f32.mrf.mxu1 }
 0x829   :  { %916 = vrot.lane.b32.xlu1 %v3169_v39, %s3536_s7 }
 0x82a   :  { %v897_v40 = vpop.f32.mrf.mxu1 }
 0x82b   :  { %914 = vrot.lane.b32.xlu0 %v897_v40, %s3536_s7 }
 0x890   :  { %v913_v41 = vpop.permute.xlu1 %912 }
 0x891   :  { %v923_v51 = vsel %vm62_vm1, %v3695_v45, %v913_v41  ;;  %v2886_v41 = vld [vmem:[#allocation5 + $0xc6] ss:$0 sm:$0xff] }
 0x892   :  { %v911_v42 = vpop.permute.xlu0 %910 }
 0x893   :  { %v922_v43 = vsel %vm62_vm1, %v3697_v47, %v911_v42  ;;  %v2880_v47 = vld [vmem:[#allocation5 + $0xc2] ss:$0 sm:$0xff] }
 0x894   :  { %3172 = vmatprep.mubr.msk.f32.mxu1 %vm272_vm3, %v922_v43 }
 0x895   :  { %3173 = vmatmul.mubr.msk.f32.vlgmr.msra.gmra.mxu1 %vm272_vm3, %v923_v51 }
 0x89b   :  { %v917_v52 = vpop.permute.xlu1 %916 }
 0x89c   :  { %v925_v55 = vsel %vm62_vm1, %v3699_v48, %v917_v52 }
 0x89d   :  { %v915_v53 = vpop.permute.xlu0 %914 }
 0x89e   :  { %v924_v54 = vsel %vm62_vm1, %v3701_v50, %v915_v53 }
 0x89f   :  { %3175 = vmatprep.mubr.msk.f32.mxu1 %vm272_vm3, %v924_v54 }
 0x8a0   :  { %3176 = vmatmul.mubr.msk.f32.gmra.mxu1 %vm272_vm3, %v925_v55 }
 0x955   :  { %v3174_v57 = vpop.f32.mrf.mxu1 }
 0x956   :  { %v1016_v58 = vadd.f32 %v3174_v57, %v2880_v47 }
 0x957   :  { %v1010_v45 = vpop.f32.mrf.mxu1 }
 0x958   :  { %v1011_v59 = vadd.f32 %v2880_v47, %v1010_v45  ;;  %v1030_v60 = vadd.f32 %v1016_v58, %v3589_v22 }
 0x95a   :  { %v1038_v61 = vsel %vm272_vm3, %v1030_v60, 0.0  ;;  %v1029_v62 = vadd.f32 %v1011_v59, %v3587_v21  ;;  %v1322_v59 = vld [vmem:[#allocation5 + $0x58] sm:$0xff] }
 0x95b   :  { %1039 = vadd.xlane.f32.xlu1 %v1038_v61  ;;  %3186 = vmatprep.subr.mxu1 %v1322_v59  ;;  %v1320_v61 = vld [vmem:[#allocation5 + $0x48] sm:$0xff] }
 0x95c   :  { %v1035_v50 = vsel %vm272_vm3, %v1029_v62, 0.0  ;;  %3187 = vmatpush3.msra.mxu1 %v1322_v59 }
 0x95d   :  { %1036 = vadd.xlane.f32.xlu0 %v1035_v50  ;;  %v1318_v50 = vld [vmem:[#allocation5 + $0x38] sm:$0xff] }
 0x960   :  { %v3177_v48 = vpop.f32.mrf.mxu1 }
 0x961   :  { %v1026_v46 = vadd.f32 %v3177_v48, %v2880_v47  ;;  %v1317_v48 = vld [vmem:[#allocation5 + $0x30] sm:$0xff] }
 0x962   :  { %v1020_v44 = vpop.f32.mrf.mxu1 }
 0x963   :  { %v1021_v63 = vadd.f32 %v2880_v47, %v1020_v44  ;;  %v1032_v2 = vadd.f32 %v1026_v46, %v3597_v26  ;;  %v1316_v44 = vld [vmem:[#allocation5 + $0x28] sm:$0xff]  ;;  %v1315_v46 = vld [vmem:[#allocation5 + $0x20] sm:$0xff] }
 0x965   :  { %v1031_v0 = vadd.f32 %v1021_v63, %v3595_v25  ;;  %v1044_v22 = vsel %vm272_vm3, %v1032_v2, 0.0  ;;  %v2887_v63 = vld [vmem:[#allocation5 + $0xc3] ss:$0 sm:$0xff] }
 0x967   :  { %v1041_v1 = vsel %vm272_vm3, %v1031_v0, 0.0 }
 0x968   :  { %1042 = vadd.xlane.f32.xlu0 %v1041_v1 }
 0x96c   :  { %1045 = vadd.xlane.f32.xlu0 %v1044_v22 }
 0x9e4   :  { %v1040_v3 = vpop.xlane.xlu1 %1039 }
 0x9e5   :  { %v1049_v21 = vmul.f32 0.125, %v1040_v3 }
 0x9e6   :  { %v1037_v56 = vpop.xlane.xlu0 %1036 }
 0x9e7   :  { %v1053_v49 = vsub.f32 %v1030_v60, %v1049_v21  ;;  %v1048_v4 = vmul.f32 0.125, %v1037_v56  ;;  %v1321_v60 = vld [vmem:[#allocation5 + $0x50] sm:$0xff] }
 0x9e8   :  { %3188 = vmatprep.subr.mxu1 %v1321_v60 }
 0x9e9   :  { %v1052_v5 = vsub.f32 %v1029_v62, %v1048_v4  ;;  %v1057_v6 = vmul.f32 %v1053_v49, %v1053_v49  ;;  %3189 = vmatpush3.msra.mxu1 %v1321_v60  ;;  %v1319_v62 = vld [vmem:[#allocation5 + $0x40] sm:$0xff] }
 0x9ea   :  { %3190 = vmatprep.subr.mxu1 %v1320_v61 }
 0x9eb   :  { %v1063_v7 = vsel %vm272_vm3, %v1057_v6, 0.0  ;;  %v1056_v8 = vmul.f32 %v1052_v5, %v1052_v5  ;;  %3191 = vmatpush3.msra.mxu1 %v1320_v61 }
 0x9ec   :  { %1064 = vadd.xlane.f32.xlu0 %v1063_v7  ;;  %3192 = vmatprep.subr.mxu1 %v1319_v62 }
 0x9ed   :  { %v1060_v25 = vsel %vm272_vm3, %v1056_v8, 0.0  ;;  %3193 = vmatpush3.msra.mxu1 %v1319_v62 }
 0x9ee   :  { %1061 = vadd.xlane.f32.xlu1 %v1060_v25  ;;  %3194 = vmatprep.subr.mxu1 %v1318_v50 }
 0x9ef   :  { %3195 = vmatpush3.msra.mxu1 %v1318_v50 }
 0x9f0   :  { %3196 = vmatprep.subr.mxu1 %v1317_v48 }
 0x9f1   :  { %v1043_v33 = vpop.xlane.xlu0 %1042  ;;  %3197 = vmatpush3.msra.mxu1 %v1317_v48 }
 0x9f2   :  { %v1050_v26 = vmul.f32 0.125, %v1043_v33  ;;  %3198 = vmatprep.subr.mxu1 %v1316_v44 }
 0x9f3   :  { %3199 = vmatpush3.msra.mxu1 %v1316_v44 }
 0x9f4   :  { %v1054_v9 = vsub.f32 %v1031_v0, %v1050_v26  ;;  %3200 = vmatprep.subr.mxu1 %v1315_v46 }
 0x9f5   :  { %v1046_v10 = vpop.xlane.xlu0 %1045  ;;  %3201 = vmatpush3.msra.mxu1 %v1315_v46 }
 0x9f6   :  { %v1051_v11 = vmul.f32 0.125, %v1046_v10  ;;  %v1058_v12 = vmul.f32 %v1054_v9, %v1054_v9 }
 0x9f8   :  { %v1055_v13 = vsub.f32 %v1032_v2, %v1051_v11  ;;  %v1066_v14 = vsel %vm272_vm3, %v1058_v12, 0.0 }
 0x9f9   :  { %1067 = vadd.xlane.f32.xlu1 %v1066_v14 }
 0x9fa   :  { %v1059_v15 = vmul.f32 %v1055_v13, %v1055_v13 }
 0x9fc   :  { %v1069_v16 = vsel %vm272_vm3, %v1059_v15, 0.0 }
 0x9fd   :  { %1070 = vadd.xlane.f32.xlu0 %v1069_v16 }
 0xa75   :  { %v1065_v18 = vpop.xlane.xlu0 %1064 }
 0xa76   :  { %v1073_v19 = vmul.f32 0.125, %v1065_v18 }
 0xa77   :  { %v1062_v29 = vpop.xlane.xlu1 %1061 }
 0xa78   :  { %v1077_v20 = vadd.f32 1e-05, %v1073_v19  ;;  %v1072_v35 = vmul.f32 0.125, %v1062_v29 }
 0xa7a   :  { %3361 = vrsqrt.f32 %v1077_v20  ;;  %v1076_v23 = vadd.f32 1e-05, %v1072_v35 }
 0xa7c   :  { %3363 = vrsqrt.f32 %v1076_v23 }
 0xa82   :  { %v1068_v24 = vpop.xlane.xlu1 %1067 }
 0xa83   :  { %v1074_v31 = vmul.f32 0.125, %v1068_v24 }
 0xa85   :  { %v1078_v27 = vadd.f32 1e-05, %v1074_v31 }
 0xa86   :  { %v1071_v28 = vpop.xlane.xlu0 %1070 }
 0xa87   :  { %v3362_v30 = vpop.eup %3361  ;;  %3365 = vrsqrt.f32 %v1078_v27  ;;  %v1075_v32 = vmul.f32 0.125, %v1071_v28 }
 0xa88   :  { %v1085_v34 = vmul.f32 %v3362_v30, %v1053_v49 }
 0xa89   :  { %v3364_v37 = vpop.eup %3363  ;;  %v1079_v38 = vadd.f32 1e-05, %v1075_v32 }
 0xa8a   :  { %v1084_v39 = vmul.f32 %v3364_v37, %v1052_v5  ;;  %v1093_v40 = vmul.f32 %v2885_v36, %v1085_v34 }
 0xa8b   :  { %3367 = vrsqrt.f32 %v1079_v38 }
 0xa8c   :  { %v1092_v42 = vmul.f32 %v2885_v36, %v1084_v39  ;;  %v3757_v51 = vadd.f32 %v2886_v41, %v1093_v40 }
 0xa8e   :  { %v3755_v43 = vadd.f32 %v2886_v41, %v1092_v42 }
 0xa90   :  { %3180 = vmatprep.mubr.msk.f32.mxu0 %vm272_vm3, %v3755_v43 }
 0xa91   :  { %3181 = vmatmul.mubr.msk.f32.vlgmr.msra.gmra.mxu0 %vm272_vm3, %v3757_v51 }
 0xa94   :  { %v3366_v52 = vpop.eup %3365 }
 0xa95   :  { %v1086_v53 = vmul.f32 %v3366_v52, %v1054_v9 }
 0xa97   :  { %v1094_v54 = vmul.f32 %v2885_v36, %v1086_v53 }
 0xa98   :  { %v3368_v55 = vpop.eup %3367 }
 0xa99   :  { %v3763_v47 = vadd.f32 %v2886_v41, %v1094_v54  ;;  %v1087_v57 = vmul.f32 %v3368_v55, %v1055_v13 }
 0xa9b   :  { %3183 = vmatprep.mubr.msk.f32.mxu0 %vm272_vm3, %v3763_v47  ;;  %v1095_v58 = vmul.f32 %v2885_v36, %v1087_v57 }
 0xa9d   :  { %v3767_v45 = vadd.f32 %v2886_v41, %v1095_v58 }
 0xa9f   :  { %3184 = vmatmul.mubr.msk.f32.gmra.mxu0 %vm272_vm3, %v3767_v45 }
 0xb51   :  { %v3182_v0 = vpop.f32.mrf.mxu0 }
 0xb52   :  { %v3771_v1 = vadd.f32 %v3182_v0, %v2887_v63 }
 0xb53   :  { %v1188_v2 = vpop.f32.mrf.mxu0 }
 0xb54   :  { %v3774_v22 = vmul.f32 0.70710677, %v3771_v1  ;;  %v3776_v3 = vadd.f32 %v2887_v63, %v1188_v2 }
 0xb56   :  { %v1224_v21 = vand.u32 2147483647, %v3774_v22  ;;  %v3780_v56 = vmul.f32 0.70710677, %v3776_v3  ;;  %vm1216_vm4 = vcmp.ge.f32.partialorder %v3774_v22, 0.0 }
 0xb58   :  { %v1228_v49 = vmul.f32 0.3275911, %v1224_v21  ;;  %v1223_v4 = vand.u32 2147483647, %v3780_v56  ;;  %v1280_v26 = vsub.f32 0.0, %v1224_v21  ;;  %vm1215_vm5 = vcmp.ge.f32.partialorder %v3780_v56, 0.0 }
 0xb59   :  { %v1208_v56 = vmul.f32 0.5, %v3771_v1 }
 0xb5a   :  { %v1232_v5 = vadd.f32 1.0, %v1228_v49  ;;  %v1227_v6 = vmul.f32 0.3275911, %v1223_v4  ;;  %v1279_v13 = vsub.f32 0.0, %v1223_v4  ;;  %v1284_v14 = vmul.f32 %v1280_v26, %v1224_v21 }
 0xb5c   :  { %3369 = vrcp.f32 %v1232_v5  ;;  %v1231_v7 = vadd.f32 1.0, %v1227_v6  ;;  %v1283_v29 = vmul.f32 %v1279_v13, %v1223_v4  ;;  %v1289_v35 = vmul.f32 1.442695, %v1284_v14 }
 0xb5d   :  { %v3537_v6 = vmov -1.0  }
 0xb5e   :  { %3371 = vrcp.f32 %v1231_v7  ;;  %v1287_v28 = vmul.f32 1.442695, %v1283_v29  ;;  %v1220_v7 = vsel %vm1216_vm4, 1.0, %v3537_v6 }
 0xb5f   :  { %v3185_v8 = vpop.f32.mrf.mxu0 }
 0xb60   :  { %v3783_v25 = vadd.f32 %v3185_v8, %v2887_v63 }
 0xb61   :  { %v1198_v33 = vpop.f32.mrf.mxu0 }
 0xb62   :  { %v3786_v9 = vmul.f32 0.70710677, %v3783_v25  ;;  %v3788_v10 = vadd.f32 %v2887_v63, %v1198_v33 }
 0xb64   :  { %v1226_v11 = vand.u32 2147483647, %v3786_v9  ;;  %v3792_v12 = vmul.f32 0.70710677, %v3788_v10  ;;  %vm1218_vm7 = vcmp.ge.f32.partialorder %v3786_v9, 0.0 }
 0xb65   :  { %v1222_v1 = vsel %vm1218_vm7, 1.0, %v3537_v6 }
 0xb66   :  { %v1230_v15 = vmul.f32 0.3275911, %v1226_v11  ;;  %v1225_v16 = vand.u32 2147483647, %v3792_v12  ;;  %v1282_v36 = vsub.f32 0.0, %v1226_v11  ;;  %vm1217_vm8 = vcmp.ge.f32.partialorder %v3792_v12, 0.0 }
 0xb68   :  { %v1234_v17 = vadd.f32 1.0, %v1230_v15  ;;  %v1229_v18 = vmul.f32 0.3275911, %v1225_v16  ;;  %v1281_v40 = vsub.f32 0.0, %v1225_v16  ;;  %v1286_v42 = vmul.f32 %v1282_v36, %v1226_v11 }
 0xb69   :  { %v3370_v19 = vpop.eup %3369 }
 0xb6a   :  { %v1244_v20 = vmul.f32 1.0614054, %v3370_v19  ;;  %3373 = vrcp.f32 %v1234_v17  ;;  %v1233_v23 = vadd.f32 1.0, %v1229_v18  ;;  %v1285_v57 = vmul.f32 %v1281_v40, %v1225_v16 }
 0xb6b   :  { %v3372_v24 = vpop.eup %3371  ;;  %v1293_v60 = vmul.f32 1.442695, %v1286_v42  ;;  %v1219_v16 = vsel %vm1215_vm5, 1.0, %v3537_v6 }
 0xb6c   :  { %v1248_v31 = vadd.f32 -1.4531521, %v1244_v20  ;;  %v1243_v27 = vmul.f32 1.0614054, %v3372_v24  ;;  %3375 = vrcp.f32 %v1233_v23  ;;  %v1291_v0 = vmul.f32 1.442695, %v1285_v57 }
 0xb6d   :  { %3377 = vpow2.f32 %v1289_v35  ;;  %v1207_v35 = vmul.f32 0.5, %v3776_v3  ;;  %v1210_v57 = vmul.f32 0.5, %v3783_v25 }
 0xb6e   :  { %v1252_v30 = vmul.f32 %v3370_v19, %v1248_v31  ;;  %v1247_v32 = vadd.f32 -1.4531521, %v1243_v27  ;;  %3379 = vpow2.f32 %v1287_v28 }
 0xb6f   :  { %3381 = vpow2.f32 %v1293_v60  ;;  %v2892_v60 = vld [vmem:[#allocation5 + $0xc4] ss:$0 sm:$0xff] }
 0xb70   :  { %v1256_v34 = vadd.f32 1.4214138, %v1252_v30  ;;  %v1251_v37 = vmul.f32 %v3372_v24, %v1247_v32  ;;  %3383 = vpow2.f32 %v1291_v0 }
 0xb72   :  { %v1260_v38 = vmul.f32 %v3370_v19, %v1256_v34  ;;  %v1255_v39 = vadd.f32 1.4214138, %v1251_v37 }
 0xb74   :  { %v1264_v41 = vadd.f32 -0.28449672, %v1260_v38  ;;  %v1259_v52 = vmul.f32 %v3372_v24, %v1255_v39 }
 0xb76   :  { %v1268_v53 = vmul.f32 %v3370_v19, %v1264_v41  ;;  %v1263_v55 = vadd.f32 -0.28449672, %v1259_v52  ;;  %v1221_v52 = vsel %vm1217_vm8, 1.0, %v3537_v6 }
 0xb77   :  { %v3374_v54 = vpop.eup %3373 }
 0xb78   :  { %v1272_v58 = vadd.f32 0.2548296, %v1268_v53  ;;  %v1246_v59 = vmul.f32 1.0614054, %v3374_v54  ;;  %v1267_v61 = vmul.f32 %v3372_v24, %v1263_v55  ;;  %v1209_v55 = vmul.f32 0.5, %v3788_v10 }
 0xb79   :  { %v3376_v62 = vpop.eup %3375 }
 0xb7a   :  { %v1276_v50 = vmul.f32 %v3370_v19, %v1272_v58  ;;  %v1250_v48 = vadd.f32 -1.4531521, %v1246_v59  ;;  %v3378_v44 = vpop.eup %3377  ;;  %v1271_v46 = vadd.f32 0.2548296, %v1267_v61  ;;  %v1245_v63 = vmul.f32 1.0614054, %v3376_v62 }
 0xb7b   :  { %v3380_v5 = vpop.eup %3379 }
 0xb7c   :  { %v1296_v2 = vmul.f32 %v3378_v44, %v1276_v50  ;;  %v1254_v21 = vmul.f32 %v3374_v54, %v1250_v48  ;;  %v1275_v49 = vmul.f32 %v3372_v24, %v1271_v46  ;;  %v1249_v4 = vadd.f32 -1.4531521, %v1245_v63  ;;  %v3382_v34 = vpop.eup %3381 }
 0xb7d   :  { %v3384_v38 = vpop.eup %3383 }
 0xb7e   :  { %v1300_v8 = vsub.f32 1.0, %v1296_v2  ;;  %v1258_v33 = vadd.f32 1.4214138, %v1254_v21  ;;  %v1295_v22 = vmul.f32 %v3380_v5, %v1275_v49  ;;  %v1253_v26 = vmul.f32 %v3376_v62, %v1249_v4 }
 0xb80   :  { %v1304_v11 = vmul.f32 %v1300_v8, %v1220_v7  ;;  %v1262_v13 = vmul.f32 %v3374_v54, %v1258_v33  ;;  %v1299_v14 = vsub.f32 1.0, %v1295_v22  ;;  %v1257_v15 = vadd.f32 1.4214138, %v1253_v26 }
 0xb82   :  { %v1266_v17 = vadd.f32 -0.28449672, %v1262_v13  ;;  %v1303_v18 = vmul.f32 %v1299_v14, %v1219_v16  ;;  %v1261_v19 = vmul.f32 %v3376_v62, %v1257_v15  ;;  %v1308_v29 = vadd.f32 1.0, %v1304_v11 }
 0xb84   :  { %v1270_v20 = vmul.f32 %v3374_v54, %v1266_v17  ;;  %v1307_v23 = vadd.f32 1.0, %v1303_v18  ;;  %v1265_v24 = vadd.f32 -0.28449672, %v1261_v19  ;;  %v1312_v30 = vmul.f32 %v1308_v29, %v1208_v56 }
 0xb86   :  { %v1274_v31 = vadd.f32 0.2548296, %v1270_v20  ;;  %v1311_v27 = vmul.f32 %v1307_v23, %v1207_v35  ;;  %v1269_v28 = vmul.f32 %v3376_v62, %v1265_v24  ;;  %v1500_v23 = vld [vmem:[#allocation5 + $0x60] sm:$0xff] }
 0xb87   :  { %3208 = vmatprep.subr.mxu0 %v1500_v23 }
 0xb88   :  { %v1278_v32 = vmul.f32 %v3374_v54, %v1274_v31  ;;  %v1273_v36 = vadd.f32 0.2548296, %v1269_v28  ;;  %3202 = vmatprep.mubr.msk.f32.mxu1 %vm1328_vm6, %v1311_v27  ;;  %3209 = vmatpush3.msra.mxu0 %v1500_v23 }
 0xb89   :  { %3203 = vmatmul.mubr.msk.f32.vlgmr.msra.gmra.mxu1 %vm1328_vm6, %v1312_v30 }
 0xb8a   :  { %v1298_v37 = vmul.f32 %v3382_v34, %v1278_v32  ;;  %v1277_v3 = vmul.f32 %v3376_v62, %v1273_v36 }
 0xb8c   :  { %v1302_v39 = vsub.f32 1.0, %v1298_v37  ;;  %v1297_v40 = vmul.f32 %v3384_v38, %v1277_v3 }
 0xb8e   :  { %v1306_v41 = vmul.f32 %v1302_v39, %v1222_v1  ;;  %v1301_v42 = vsub.f32 1.0, %v1297_v40  ;;  %v2897_v40 = vld [vmem:[#allocation5 + $0xc7] ss:$0 sm:$0xff] }
 0xb90   :  { %v1305_v53 = vmul.f32 %v1301_v42, %v1221_v52  ;;  %v1310_v54 = vadd.f32 1.0, %v1306_v41 }
 0xb92   :  { %v1309_v9 = vadd.f32 1.0, %v1305_v53  ;;  %v1314_v59 = vmul.f32 %v1310_v54, %v1210_v57  ;;  %v2898_v53 = vld [vmem:[#allocation5 + $0xc8] ss:$0 sm:$0xff] }
 0xb94   :  { %v1313_v58 = vmul.f32 %v1309_v9, %v1209_v55 }
 0xb96   :  { %3205 = vmatprep.mubr.msk.f32.mxu1 %vm1328_vm6, %v1313_v58 }
 0xb97   :  { %3206 = vmatmul.mubr.msk.f32.gmra.mxu1 %vm1328_vm6, %v1314_v59 }
 0xc49   :  { %v3204_v12 = vpop.f32.mrf.mxu1 }
 0xc4a   :  { %v1413_v61 = vadd.f32 %v3204_v12, %v2892_v60 }
 0xc4b   :  { %v1407_v62 = vpop.f32.mrf.mxu1 }
 0xc4c   :  { %v1408_v50 = vadd.f32 %v2892_v60, %v1407_v62  ;;  %v1427_v48 = vadd.f32 %v1413_v61, %v3757_v51 }
 0xc4e   :  { %v1435_v44 = vsel %vm272_vm3, %v1427_v48, 0.0  ;;  %v1426_v10 = vadd.f32 %v1408_v50, %v3755_v43 }
 0xc4f   :  { %1436 = vadd.xlane.f32.xlu0 %v1435_v44  ;;  %v2899_v44 = vld [vmem:[#allocation5 + $0xc9] ss:$0 sm:$0xff] }
 0xc50   :  { %v1432_v25 = vsel %vm272_vm3, %v1426_v10, 0.0 }
 0xc51   :  { %1433 = vadd.xlane.f32.xlu1 %v1432_v25 }
 0xc57   :  { %v3207_v46 = vpop.f32.mrf.mxu1 }
 0xc58   :  { %v1423_v63 = vadd.f32 %v3207_v46, %v2892_v60 }
 0xc59   :  { %v1417_v0 = vpop.f32.mrf.mxu1 }
 0xc5a   :  { %v1418_v2 = vadd.f32 %v2892_v60, %v1417_v0  ;;  %v1429_v21 = vadd.f32 %v1423_v63, %v3767_v45 }
 0xc5c   :  { %v1441_v49 = vsel %vm272_vm3, %v1429_v21, 0.0  ;;  %v1428_v4 = vadd.f32 %v1418_v2, %v3763_v47 }
 0xc5d   :  { %1442 = vadd.xlane.f32.xlu0 %v1441_v49 }
 0xc5e   :  { %v1438_v51 = vsel %vm272_vm3, %v1428_v4, 0.0 }
 0xc5f   :  { %1439 = vadd.xlane.f32.xlu1 %v1438_v51 }
 0xcd8   :  { %v1437_v5 = vpop.xlane.xlu0 %1436 }
 0xcd9   :  { %v1445_v43 = vmul.f32 0.125, %v1437_v5 }
 0xcda   :  { %v1434_v7 = vpop.xlane.xlu1 %1433 }
 0xcdb   :  { %v1449_v8 = vsub.f32 %v1427_v48, %v1445_v43  ;;  %v1444_v33 = vmul.f32 0.125, %v1434_v7 }
 0xcdd   :  { %v1448_v22 = vsub.f32 %v1426_v10, %v1444_v33  ;;  %v1453_v26 = vmul.f32 %v1449_v8, %v1449_v8 }
 0xcdf   :  { %v1459_v11 = vsel %vm272_vm3, %v1453_v26, 0.0  ;;  %v1452_v13 = vmul.f32 %v1448_v22, %v1448_v22  ;;  %v3879_v26 = vld [vmem:[#allocation2 + $0x28] sm:$0xff] }
 0xce0   :  { %1460 = vadd.xlane.f32.xlu0 %v1459_v11 }
 0xce1   :  { %v1456_v45 = vsel %vm272_vm3, %v1452_v13, 0.0 }
 0xce2   :  { %1457 = vadd.xlane.f32.xlu1 %v1456_v45  ;;  %v3882_v45 = vld [vmem:[#allocation2 + $0x20] sm:$0xff] }
 0xce6   :  { %v1443_v14 = vpop.xlane.xlu0 %1442 }
 0xce7   :  { %v1447_v47 = vmul.f32 0.125, %v1443_v14 }
 0xce8   :  { %v1440_v15 = vpop.xlane.xlu1 %1439 }
 0xce9   :  { %v1451_v16 = vsub.f32 %v1429_v21, %v1447_v47  ;;  %v1446_v17 = vmul.f32 0.125, %v1440_v15 }
 0xceb   :  { %v1450_v18 = vsub.f32 %v1428_v4, %v1446_v17  ;;  %v1455_v19 = vmul.f32 %v1451_v16, %v1451_v16 }
 0xced   :  { %v1465_v29 = vsel %vm272_vm3, %v1455_v19, 0.0  ;;  %v1454_v20 = vmul.f32 %v1450_v18, %v1450_v18 }
 0xcee   :  { %1466 = vadd.xlane.f32.xlu0 %v1465_v29  ;;  %v3890_v29 = vld [vmem:[#allocation2 + $0x30] sm:$0xff] }
 0xcef   :  { %v1462_v35 = vsel %vm272_vm3, %v1454_v20, 0.0 }
 0xcf0   :  { %1463 = vadd.xlane.f32.xlu1 %v1462_v35 }
 0xd69   :  { %v1461_v24 = vpop.xlane.xlu0 %1460 }
 0xd6a   :  { %v1469_v56 = vmul.f32 0.125, %v1461_v24 }
 0xd6b   :  { %v1458_v31 = vpop.xlane.xlu1 %1457 }
 0xd6c   :  { %v1473_v27 = vadd.f32 1e-05, %v1469_v56  ;;  %v1468_v28 = vmul.f32 0.125, %v1458_v31 }
 0xd6e   :  { %3385 = vrsqrt.f32 %v1473_v27  ;;  %v1472_v30 = vadd.f32 1e-05, %v1468_v28 }
 0xd70   :  { %3387 = vrsqrt.f32 %v1472_v30 }
 0xd77   :  { %v1467_v32 = vpop.xlane.xlu0 %1466 }
 0xd78   :  { %v1471_v34 = vmul.f32 0.125, %v1467_v32 }
 0xd79   :  { %v1464_v36 = vpop.xlane.xlu1 %1463 }
 0xd7a   :  { %v1475_v37 = vadd.f32 1e-05, %v1471_v34  ;;  %v1470_v3 = vmul.f32 0.125, %v1464_v36 }
 0xd7b   :  { %v3386_v38 = vpop.eup %3385 }
 0xd7c   :  { %v1481_v39 = vmul.f32 %v3386_v38, %v1449_v8  ;;  %3389 = vrsqrt.f32 %v1475_v37  ;;  %v1474_v1 = vadd.f32 1e-05, %v1470_v3 }
 0xd7d   :  { %v3388_v41 = vpop.eup %3387 }
 0xd7e   :  { %3391 = vrsqrt.f32 %v1474_v1  ;;  %v1480_v42 = vmul.f32 %v3388_v41, %v1448_v22  ;;  %v1489_v52 = vmul.f32 %v2897_v40, %v1481_v39 }
 0xd80   :  { %v1488_v54 = vmul.f32 %v2897_v40, %v1480_v42  ;;  %v3825_v9 = vadd.f32 %v2898_v53, %v1489_v52 }
 0xd82   :  { %v3823_v55 = vadd.f32 %v2898_v53, %v1488_v54 }
 0xd84   :  { %3210 = vmatprep.mubr.msk.f32.mxu0 %vm272_vm3, %v3823_v55 }
 0xd85   :  { %3211 = vmatmul.mubr.msk.f32.vlgmr.msra.gmra.mxu0 %vm272_vm3, %v3825_v9 }
 0xd89   :  { %v3390_v57 = vpop.eup %3389 }
 0xd8a   :  { %v1483_v58 = vmul.f32 %v3390_v57, %v1451_v16  ;;  %v3886_v16 = vld [vmem:[#allocation2 + $0x38] sm:$0xff] }
 0xd8b   :  { %v3392_v59 = vpop.eup %3391 }
 0xd8c   :  { %v1482_v60 = vmul.f32 %v3392_v59, %v1450_v18  ;;  %v1491_v12 = vmul.f32 %v2897_v40, %v1483_v58 }
 0xd8e   :  { %v1490_v61 = vmul.f32 %v2897_v40, %v1482_v60  ;;  %v3833_v50 = vadd.f32 %v2898_v53, %v1491_v12 }
 0xd90   :  { %v3831_v62 = vadd.f32 %v2898_v53, %v1490_v61 }
 0xd92   :  { %3213 = vmatprep.mubr.msk.f32.mxu0 %vm272_vm3, %v3831_v62 }
 0xd93   :  { %3214 = vmatmul.mubr.msk.f32.gmra.mxu0 %vm272_vm3, %v3833_v50 }
 0xe45   :  { %v3212_v48 = vpop.f32.mrf.mxu0 }
 0xe46   :  { %v3849_v21 = vadd.f32 %v3212_v48, %v2899_v44 }
 0xe47   :  { %v1584_v10 = vpop.f32.mrf.mxu0 }
 0xe48   :  { %v3839_v25 = vadd.f32 %v2899_v44, %v1584_v10 }
 0xe4a   :  { %3224 = vmatprep.mubr.msk.f32.mxu0 %vm62_vm1, %v3839_v25 }
 0xe53   :  { %v3215_v46 = vpop.f32.mrf.mxu0 }
 0xe54   :  { %v3843_v63 = vadd.f32 %v3215_v46, %v2899_v44 }
 0xe55   :  { %v1594_v0 = vpop.f32.mrf.mxu0 }
 0xe56   :  { %v3845_v2 = vadd.f32 %v2899_v44, %v1594_v0  ;;  %1613 = vrot.lane.b32.xlu1 %v3843_v63, %s3531_s0 }
 0xe58   :  { %1611 = vrot.lane.b32.xlu0 %v3845_v2, %s3531_s0 }
 0xe5a   :  { %1609 = vrot.lane.b32.xlu1 %v3849_v21, %s3531_s0 }
 0xe5c   :  { %1764 = vrot.lane.b32.xlu0 %v3845_v2, %s3532_s30 }
 0xe5e   :  { %1607 = vrot.lane.b32.xlu1 %v3839_v25, %s3531_s0 }
 0xe62   :  { %1766 = vrot.lane.b32.xlu1 %v3843_v63, %s3532_s30 }
 0xe66   :  { %1762 = vrot.lane.b32.xlu1 %v3849_v21, %s3532_s30 }
 0xe6a   :  { %1760 = vrot.lane.b32.xlu1 %v3839_v25, %s3532_s30 }
 0xec8   :  { %v1614_v49 = vpop.permute.xlu1 %1613 }
 0xec9   :  { %3216 = vmatprep.subr.msk.mxu0 %vm62_vm1, %v1614_v49 }
 0xeca   :  { %3217 = vmatpush3.xpose.msk.msra.mxu0 %vm62_vm1, %v1614_v49  ;;  %v1612_v4 = vpop.permute.xlu0 %1611 }
 0xecb   :  { %3218 = vmatprep.subr.msk.mxu0 %vm62_vm1, %v1612_v4 }
 0xecc   :  { %v1610_v51 = vpop.permute.xlu1 %1609 }
 0xece   :  { %3219 = vmatpush3.xpose.msk.msra.mxu0 %vm62_vm1, %v1612_v4  ;;  %v1765_v7 = vpop.permute.xlu0 %1764 }
 0xecf   :  { %3220 = vmatprep.subr.msk.mxu0 %vm62_vm1, %v1610_v51 }
 0xed0   :  { %v1608_v5 = vpop.permute.xlu1 %1607 }
 0xed2   :  { %3221 = vmatpush3.xpose.msk.msra.mxu0 %vm62_vm1, %v1610_v51 }
 0xed3   :  { %3222 = vmatprep.subr.msk.mxu0 %vm62_vm1, %v1608_v5 }
 0xed4   :  { %v1767_v43 = vpop.permute.xlu1 %1766 }
 0xed5   :  { %3230 = vmatprep.subr.mxu1 %v1767_v43 }
 0xed6   :  { %3223 = vmatpush3.xpose.msk.msra.mxu0 %vm62_vm1, %v1608_v5  ;;  %3231 = vmatpush3.msra.mxu1 %v1767_v43 }
 0xed7   :  { %3232 = vmatprep.subr.mxu1 %v1765_v7 }
 0xed8   :  { %v1763_v8 = vpop.permute.xlu1 %1762  ;;  %3233 = vmatpush3.msra.mxu1 %v1765_v7 }
 0xed9   :  { %3225 = vmatmul.mubr.msk.f32.vlgmr.msra.gmra.mxu0 %vm62_vm1, %v3849_v21  ;;  %3234 = vmatprep.subr.mxu1 %v1763_v8 }
 0xeda   :  { %3227 = vmatprep.mubr.msk.f32.mxu0 %vm62_vm1, %v3845_v2  ;;  %3235 = vmatpush3.msra.mxu1 %v1763_v8 }
 0xedc   :  { %v1761_v33 = vpop.permute.xlu1 %1760 }
 0xedd   :  { %3228 = vmatmul.mubr.msk.f32.gmra.mxu0 %vm62_vm1, %v3843_v63  ;;  %3236 = vmatprep.subr.mxu1 %v1761_v33 }
 0xede   :  { %3237 = vmatpush3.msra.mxu1 %v1761_v33 }
 0xf99   :  { %v3226_v22 = vpop.f32.mrf.mxu0 }
 0xf9a   :  { %v1703_v11 = vadd.f32 %v3879_v26, %v3226_v22 }
 0xf9b   :  { %v1697_v13 = vpop.f32.mrf.mxu0 }
 0xf9c   :  { %v1698_v14 = vadd.f32 %v3882_v45, %v1697_v13  ;;  %v1719_v47 = vsel %vm164_vm2, %v1703_v11, -inf }
 0xf9d   :  { %1720 = vmax.xlane.f32.xlu1 %v1719_v47  ;;  %v3229_v15 = vpop.f32.mrf.mxu0 }
 0xf9e   :  { %v1713_v17 = vadd.f32 %v3886_v16, %v3229_v15  ;;  %v1716_v18 = vsel %vm164_vm2, %v1698_v14, -inf }
 0xf9f   :  { %v1707_v19 = vpop.f32.mrf.mxu0  ;;  %1717 = vmax.xlane.f32.xlu0 %v1716_v18 }
 0xfa0   :  { %v1708_v20 = vadd.f32 %v3890_v29, %v1707_v19  ;;  %v1725_v35 = vsel %vm164_vm2, %v1713_v17, -inf }
 0xfa2   :  { %v1722_v23 = vsel %vm164_vm2, %v1708_v20, -inf }
 0xfa3   :  { %1726 = vmax.xlane.f32.xlu0 %v1725_v35 }
 0xfa7   :  { %1723 = vmax.xlane.f32.xlu0 %v1722_v23 }
 0xfae   :  { %1881 = vrot.lane.b32.xlu1 %v3845_v2, %s3533_s4 }
 0xfbd   :  { %1883 = vrot.lane.b32.xlu0 %v3843_v63, %s3533_s4 }
0x1026   :  { %v1721_v24 = vpop.xlane.xlu1 %1720 }
0x1027   :  { %v1729_v56 = vsub.f32 %v1703_v11, %v1721_v24 }
0x1028   :  { %v1718_v31 = vpop.xlane.xlu0 %1717 }
0x1029   :  { %v1734_v27 = vmul.f32 1.442695, %v1729_v56  ;;  %v1728_v28 = vsub.f32 %v1698_v14, %v1718_v31 }
0x102a   :  { %v1882_v58 = vpop.permute.xlu1 %1881 }
0x102b   :  { %3393 = vpow2.f32 %v1734_v27  ;;  %v1732_v30 = vmul.f32 1.442695, %v1728_v28 }
0x102c   :  { %v1727_v32 = vpop.xlane.xlu0 %1726 }
0x102d   :  { %3395 = vpow2.f32 %v1732_v30  ;;  %v1731_v1 = vsub.f32 %v1713_v17, %v1727_v32 }
0x102f   :  { %v1738_v41 = vmul.f32 1.442695, %v1731_v1 }
0x1030   :  { %v1724_v34 = vpop.xlane.xlu0 %1723 }
0x1031   :  { %v1730_v40 = vsub.f32 %v1708_v20, %v1724_v34  ;;  %3397 = vpow2.f32 %v1738_v41 }
0x1033   :  { %v1736_v42 = vmul.f32 1.442695, %v1730_v40 }
0x1034   :  { %v1884_v36 = vpop.permute.xlu0 %1883 }
0x1035   :  { %3244 = vmatprep.subr.msk.mxu1 %vm62_vm1, %v1884_v36  ;;  %3399 = vpow2.f32 %v1736_v42 }
0x1038   :  { %v3394_v37 = vpop.eup %3393 }
0x1039   :  { %v1743_v3 = vsel %vm164_vm2, %v3394_v37, 0.0 }
0x103a   :  { %v3396_v38 = vpop.eup %3395  ;;  %1744 = vadd.xlane.f32.xlu0 %v1743_v3 }
0x103b   :  { %v1740_v39 = vsel %vm164_vm2, %v3396_v38, 0.0 }
0x103c   :  { %1741 = vadd.xlane.f32.xlu1 %v1740_v39 }
0x103e   :  { %v3398_v52 = vpop.eup %3397 }
0x103f   :  { %v1749_v54 = vsel %vm164_vm2, %v3398_v52, 0.0 }
0x1042   :  { %v3400_v53 = vpop.eup %3399 }
0x1043   :  { %v1746_v57 = vsel %vm164_vm2, %v3400_v53, 0.0 }
0x104d   :  { %1877 = vrot.lane.b32.xlu1 %v3839_v25, %s3533_s4 }
0x1050   :  { %1879 = vrot.lane.b32.xlu0 %v3849_v21, %s3533_s4 }
0x106f   :  { %1750 = vadd.xlane.f32.xlu0 %v1749_v54 }
0x1071   :  { %1747 = vadd.xlane.f32.xlu1 %v1746_v57 }
0x1082   :  { %1871 = vrot.lane.b32.xlu1 %v3849_v21, %s3534_s5 }
0x1085   :  { %1869 = vrot.lane.b32.xlu0 %v3839_v25, %s3534_s5 }
0x1086   :  { %1875 = vrot.lane.b32.xlu1 %v3843_v63, %s3534_s5 }
0x1089   :  { %1873 = vrot.lane.b32.xlu0 %v3845_v2, %s3534_s5 }
0x10c3   :  { %v1745_v59 = vpop.xlane.xlu0 %1744 }
0x10c4   :  { %3401 = vrcp.f32 %v1745_v59 }
0x10c5   :  { %v1742_v60 = vpop.xlane.xlu1 %1741 }
0x10c6   :  { %3403 = vrcp.f32 %v1742_v60 }
0x10c7   :  { %v1880_v10 = vpop.permute.xlu0 %1879 }
0x10c9   :  { %v1878_v46 = vpop.permute.xlu1 %1877 }
0x10d1   :  { %v3402_v12 = vpop.eup %3401 }
0x10d2   :  { %v1755_v44 = vmul.f32 %v3402_v12, %v3394_v37 }
0x10d3   :  { %v3404_v61 = vpop.eup %3403 }
0x10d4   :  { %v1753_v48 = vmul.f32 %v3404_v61, %v3396_v38 }
0x10d6   :  { %3238 = vmatprep.mubr.msk.f32.mxu1 %vm164_vm2, %v1753_v48 }
0x10d7   :  { %3239 = vmatmul.mubr.msk.f32.vlgmr.msra.gmra.mxu1 %vm164_vm2, %v1755_v44 }
0x10d8   :  { %3245 = vmatpush3.xpose.msk.msra.mxu1 %vm62_vm1, %v1884_v36 }
0x10d9   :  { %3246 = vmatprep.subr.msk.mxu1 %vm62_vm1, %v1882_v58 }
0x10dc   :  { %3247 = vmatpush3.xpose.msk.msra.mxu1 %vm62_vm1, %v1882_v58 }
0x10dd   :  { %3248 = vmatprep.subr.msk.mxu1 %vm62_vm1, %v1880_v10 }
0x10e0   :  { %3249 = vmatpush3.xpose.msk.msra.mxu1 %vm62_vm1, %v1880_v10 }
0x10e1   :  { %3250 = vmatprep.subr.msk.mxu1 %vm62_vm1, %v1878_v46 }
0x10e4   :  { %3251 = vmatpush3.xpose.msk.msra.mxu1 %vm62_vm1, %v1878_v46 }
0x10f8   :  { %v1751_v0 = vpop.xlane.xlu0 %1750 }
0x10f9   :  { %3405 = vrcp.f32 %v1751_v0 }
0x10fa   :  { %v1748_v49 = vpop.xlane.xlu1 %1747 }
0x10fb   :  { %3407 = vrcp.f32 %v1748_v49 }
0x10fc   :  { %v1870_v43 = vpop.permute.xlu0 %1869 }
0x10fe   :  { %v1872_v8 = vpop.permute.xlu1 %1871 }
0x1100   :  { %v1874_v33 = vpop.permute.xlu0 %1873 }
0x1102   :  { %v1876_v22 = vpop.permute.xlu1 %1875 }
0x1106   :  { %v3406_v4 = vpop.eup %3405 }
0x1107   :  { %v1759_v7 = vmul.f32 %v3406_v4, %v3398_v52 }
0x1108   :  { %v3408_v51 = vpop.eup %3407 }
0x1109   :  { %v1757_v5 = vmul.f32 %v3408_v51, %v3400_v53  ;;  %v2159_v51 = vld [vmem:[#allocation5 + $0x68] sm:$0xff] }
0x110b   :  { %3241 = vmatprep.mubr.msk.f32.mxu1 %vm164_vm2, %v1757_v5 }
0x110c   :  { %3242 = vmatmul.mubr.msk.f32.gmra.mxu1 %vm164_vm2, %v1759_v7 }
0x110d   :  { %3252 = vmatprep.mubr.msk.f32.mxu1 %vm62_vm1, %v1870_v43 }
0x1110   :  { %3253 = vmatmul.mubr.msk.f32.vlgmr.msra.gmra.mxu1 %vm62_vm1, %v1872_v8 }
0x1111   :  { %3255 = vmatprep.mubr.msk.f32.mxu1 %vm62_vm1, %v1874_v33 }
0x1114   :  { %3256 = vmatmul.mubr.msk.f32.gmra.mxu1 %vm62_vm1, %v1876_v22 }
0x1197   :  { %v3931_v11 = vpop.f32.mrf.mxu1 }
0x1199   :  { %v3933_v13 = vpop.f32.mrf.mxu1 }
0x11cc   :  { %v3935_v14 = vpop.f32.mrf.mxu1 }
0x11ce   :  { %v3937_v47 = vpop.f32.mrf.mxu1 }
0x11d0   :  { %v3254_v15 = vpop.f32.mrf.mxu1 }
0x11d1   :  { %v1973_v17 = vadd.f32 %v3879_v26, %v3254_v15 }
0x11d2   :  { %v1967_v18 = vpop.f32.mrf.mxu1 }
0x11d3   :  { %v1968_v19 = vadd.f32 %v3882_v45, %v1967_v18  ;;  %v1989_v20 = vsel %vm164_vm2, %v1973_v17, -inf }
0x11d4   :  { %1990 = vmax.xlane.f32.xlu1 %v1989_v20  ;;  %v3257_v35 = vpop.f32.mrf.mxu1 }
0x11d5   :  { %v1986_v23 = vsel %vm164_vm2, %v1968_v19, -inf  ;;  %v1983_v31 = vadd.f32 %v3886_v16, %v3257_v35 }
0x11d6   :  { %1987 = vmax.xlane.f32.xlu0 %v1986_v23  ;;  %v1977_v24 = vpop.f32.mrf.mxu1 }
0x11d7   :  { %v1978_v56 = vadd.f32 %v3890_v29, %v1977_v24  ;;  %v1995_v26 = vsel %vm164_vm2, %v1983_v31, -inf }
0x11d9   :  { %v1992_v27 = vsel %vm164_vm2, %v1978_v56, -inf }
0x11da   :  { %1993 = vmax.xlane.f32.xlu0 %v1992_v27 }
0x11de   :  { %1996 = vmax.xlane.f32.xlu0 %v1995_v26 }
0x11e5   :  { %2036 = vrot.lane.b32.xlu1 %v3843_v63, %s3535_s6 }
0x125d   :  { %v1991_v45 = vpop.xlane.xlu1 %1990 }
0x125e   :  { %v1999_v28 = vsub.f32 %v1973_v17, %v1991_v45 }
0x125f   :  { %v1988_v30 = vpop.xlane.xlu0 %1987 }
0x1260   :  { %v2004_v32 = vmul.f32 1.442695, %v1999_v28  ;;  %v1998_v34 = vsub.f32 %v1968_v19, %v1988_v30 }
0x1261   :  { %v2037_v36 = vpop.permute.xlu1 %2036 }
0x1262   :  { %3409 = vpow2.f32 %v2004_v32  ;;  %v2002_v37 = vmul.f32 1.442695, %v1998_v34  ;;  %3258 = vmatprep.subr.mxu0 %v2037_v36 }
0x1263   :  { %3259 = vmatpush3.msra.mxu0 %v2037_v36  ;;  %v1994_v16 = vpop.xlane.xlu0 %1993 }
0x1264   :  { %3411 = vpow2.f32 %v2002_v37  ;;  %v2000_v52 = vsub.f32 %v1978_v56, %v1994_v16 }
0x1266   :  { %v2006_v53 = vmul.f32 1.442695, %v2000_v52 }
0x1267   :  { %v1997_v29 = vpop.xlane.xlu0 %1996 }
0x1268   :  { %v2001_v3 = vsub.f32 %v1983_v31, %v1997_v29 }
0x126a   :  { %v2008_v38 = vmul.f32 1.442695, %v2001_v3 }
0x126c   :  { %3413 = vpow2.f32 %v2008_v38 }
0x126d   :  { %3415 = vpow2.f32 %v2006_v53 }
0x126f   :  { %v3410_v39 = vpop.eup %3409 }
0x1270   :  { %v2013_v1 = vsel %vm164_vm2, %v3410_v39, 0.0 }
0x1271   :  { %v3412_v63 = vpop.eup %3411  ;;  %2014 = vadd.xlane.f32.xlu0 %v2013_v1 }
0x1272   :  { %v2010_v40 = vsel %vm164_vm2, %v3412_v63, 0.0 }
0x1273   :  { %2011 = vadd.xlane.f32.xlu1 %v2010_v40 }
0x1279   :  { %v3414_v41 = vpop.eup %3413 }
0x127a   :  { %v2019_v42 = vsel %vm164_vm2, %v3414_v41, 0.0  ;;  %v3416_v54 = vpop.eup %3415 }
0x127b   :  { %2020 = vadd.xlane.f32.xlu0 %v2019_v42  ;;  %v2016_v57 = vsel %vm164_vm2, %v3416_v54, 0.0 }
0x1284   :  { %2032 = vrot.lane.b32.xlu1 %v3849_v21, %s3535_s6 }
0x1291   :  { %2034 = vrot.lane.b32.xlu0 %v3845_v2, %s3535_s6 }
0x12a8   :  { %2017 = vadd.xlane.f32.xlu1 %v2016_v57 }
0x12b9   :  { %2030 = vrot.lane.b32.xlu1 %v3839_v25, %s3535_s6 }
0x12fa   :  { %v2015_v59 = vpop.xlane.xlu0 %2014 }
0x12fc   :  { %v2012_v58 = vpop.xlane.xlu1 %2011 }
0x12fd   :  { %3417 = vrcp.f32 %v2012_v58 }
0x12fe   :  { %3419 = vrcp.f32 %v2015_v59 }
0x1300   :  { %v2033_v61 = vpop.permute.xlu1 %2032 }
0x1304   :  { %v2021_v60 = vpop.xlane.xlu0 %2020 }
0x1305   :  { %3421 = vrcp.f32 %v2021_v60  ;;  %v2336_v60 = vld [vmem:[#allocation5 + $0x70] sm:$0xff] }
0x1306   :  { %3280 = vmatprep.subr.mxu1 %v2336_v60 }
0x1307   :  { %3281 = vmatpush3.msra.mxu1 %v2336_v60 }
0x1308   :  { %v2035_v12 = vpop.permute.xlu0 %2034 }
0x1309   :  { %3260 = vmatprep.subr.mxu0 %v2035_v12 }
0x130a   :  { %v3418_v21 = vpop.eup %3417  ;;  %3261 = vmatpush3.msra.mxu0 %v2035_v12 }
0x130b   :  { %3262 = vmatprep.subr.mxu0 %v2033_v61  ;;  %v2023_v2 = vmul.f32 %v3418_v21, %v3412_v63  ;;  %v3420_v44 = vpop.eup %3419 }
0x130c   :  { %3263 = vmatpush3.msra.mxu0 %v2033_v61  ;;  %v2025_v10 = vmul.f32 %v3420_v44, %v3410_v39 }
0x130d   :  { %3266 = vmatprep.mubr.msk.f32.mxu0 %vm164_vm2, %v2023_v2 }
0x1312   :  { %v3422_v46 = vpop.eup %3421 }
0x1313   :  { %v2029_v4 = vmul.f32 %v3422_v46, %v3414_v41 }
0x1331   :  { %v2018_v48 = vpop.xlane.xlu1 %2017 }
0x1332   :  { %3423 = vrcp.f32 %v2018_v48 }
0x1335   :  { %v2031_v25 = vpop.permute.xlu1 %2030 }
0x1336   :  { %3264 = vmatprep.subr.mxu0 %v2031_v25 }
0x1337   :  { %3265 = vmatpush3.msra.mxu0 %v2031_v25 }
0x1338   :  { %3267 = vmatmul.mubr.msk.f32.vlgmr.msra.gmra.mxu0 %vm164_vm2, %v2025_v10  ;;  %3272 = vmatprep.subr.mxu0 %v2159_v51 }
0x1339   :  { %3273 = vmatpush3.msra.mxu0 %v2159_v51 }
0x133f   :  { %v3424_v0 = vpop.eup %3423 }
0x1340   :  { %v2027_v49 = vmul.f32 %v3424_v0, %v3416_v54 }
0x1342   :  { %3269 = vmatprep.mubr.msk.f32.mxu0 %vm164_vm2, %v2027_v49 }
0x1343   :  { %3270 = vmatmul.mubr.msk.f32.gmra.mxu0 %vm164_vm2, %v2029_v4 }
0x13f8   :  { %v3268_v5 = vpop.f32.mrf.mxu0 }
0x13f9   :  { %2145 = vrot.lane.b32.xlu1 %v3268_v5, %s3536_s7  ;;  %v2933_v5 = vld [vmem:[#allocation5 + $0xcd] ss:$0 sm:$0xff] }
0x13fa   :  { %v2120_v43 = vpop.f32.mrf.mxu0 }
0x13fb   :  { %2143 = vrot.lane.b32.xlu0 %v2120_v43, %s3536_s7 }
0x1403   :  { %v3271_v7 = vpop.f32.mrf.mxu0 }
0x1404   :  { %2149 = vrot.lane.b32.xlu1 %v3271_v7, %s3536_s7 }
0x1405   :  { %v2130_v8 = vpop.f32.mrf.mxu0 }
0x1406   :  { %2147 = vrot.lane.b32.xlu0 %v2130_v8, %s3536_s7 }
0x146b   :  { %v2146_v33 = vpop.permute.xlu1 %2145 }
0x146c   :  { %v2156_v17 = vsel %vm62_vm1, %v3931_v11, %v2146_v33 }
0x146d   :  { %v2144_v22 = vpop.permute.xlu0 %2143 }
0x146e   :  { %v2155_v15 = vsel %vm62_vm1, %v3933_v13, %v2144_v22  ;;  %v2928_v13 = vld [vmem:[#allocation5 + $0xca] ss:$0 sm:$0xff]  ;;  %v2934_v22 = vld [vmem:[#allocation5 + $0xce] ss:$0 sm:$0xff] }
0x146f   :  { %3274 = vmatprep.mubr.msk.f32.mxu0 %vm272_vm3, %v2155_v15 }
0x1470   :  { %3275 = vmatmul.mubr.msk.f32.vlgmr.msra.gmra.mxu0 %vm272_vm3, %v2156_v17 }
0x1476   :  { %v2150_v18 = vpop.permute.xlu1 %2149 }
0x1477   :  { %v2158_v35 = vsel %vm62_vm1, %v3935_v14, %v2150_v18 }
0x1478   :  { %v2148_v19 = vpop.permute.xlu0 %2147 }
0x1479   :  { %v2157_v20 = vsel %vm62_vm1, %v3937_v47, %v2148_v19 }
0x147a   :  { %3277 = vmatprep.mubr.msk.f32.mxu0 %vm272_vm3, %v2157_v20 }
0x147b   :  { %3278 = vmatmul.mubr.msk.f32.gmra.mxu0 %vm272_vm3, %v2158_v35 }
0x1530   :  { %v3276_v23 = vpop.f32.mrf.mxu0 }
0x1531   :  { %v2249_v24 = vadd.f32 %v3276_v23, %v2928_v13 }
0x1532   :  { %v2243_v11 = vpop.f32.mrf.mxu0 }
0x1533   :  { %v2244_v56 = vadd.f32 %v2928_v13, %v2243_v11  ;;  %v2263_v31 = vadd.f32 %v2249_v24, %v3825_v9 }
0x1535   :  { %v2271_v27 = vsel %vm272_vm3, %v2263_v31, 0.0  ;;  %v2262_v26 = vadd.f32 %v2244_v56, %v3823_v55 }
0x1536   :  { %2272 = vadd.xlane.f32.xlu1 %v2271_v27  ;;  %v2553_v27 = vld [vmem:[#allocation5 + $0xa8] sm:$0xff] }
0x1537   :  { %v2268_v47 = vsel %vm272_vm3, %v2262_v26, 0.0 }
0x1538   :  { %2269 = vadd.xlane.f32.xlu0 %v2268_v47  ;;  %v2551_v47 = vld [vmem:[#allocation5 + $0x98] sm:$0xff] }
0x153b   :  { %v3279_v14 = vpop.f32.mrf.mxu0 }
0x153c   :  { %v2259_v28 = vadd.f32 %v3279_v14, %v2928_v13  ;;  %v2550_v14 = vld [vmem:[#allocation5 + $0x90] sm:$0xff] }
0x153d   :  { %v2253_v45 = vpop.f32.mrf.mxu0 }
0x153e   :  { %v2254_v30 = vadd.f32 %v2928_v13, %v2253_v45  ;;  %v2265_v34 = vadd.f32 %v2259_v28, %v3833_v50  ;;  %v2549_v45 = vld [vmem:[#allocation5 + $0x88] sm:$0xff]  ;;  %v2548_v28 = vld [vmem:[#allocation5 + $0x80] sm:$0xff] }
0x1540   :  { %v2264_v32 = vadd.f32 %v2254_v30, %v3831_v62  ;;  %v2277_v9 = vsel %vm272_vm3, %v2265_v34, 0.0  ;;  %v2547_v30 = vld [vmem:[#allocation5 + $0x78] sm:$0xff] }
0x1542   :  { %v2274_v36 = vsel %vm272_vm3, %v2264_v32, 0.0 }
0x1543   :  { %2275 = vadd.xlane.f32.xlu0 %v2274_v36 }
0x1547   :  { %2278 = vadd.xlane.f32.xlu0 %v2277_v9 }
0x15bf   :  { %v2273_v37 = vpop.xlane.xlu1 %2272 }
0x15c0   :  { %v2281_v55 = vmul.f32 0.125, %v2273_v37 }
0x15c1   :  { %v2270_v16 = vpop.xlane.xlu0 %2269 }
0x15c2   :  { %v2285_v29 = vsub.f32 %v2263_v31, %v2281_v55  ;;  %v2280_v3 = vmul.f32 0.125, %v2270_v16  ;;  %v2554_v31 = vld [vmem:[#allocation5 + $0xb0] sm:$0xff] }
0x15c3   :  { %3288 = vmatprep.subr.mxu0 %v2554_v31 }
0x15c4   :  { %v2284_v38 = vsub.f32 %v2262_v26, %v2280_v3  ;;  %v2289_v39 = vmul.f32 %v2285_v29, %v2285_v29  ;;  %3289 = vmatpush3.msra.mxu0 %v2554_v31  ;;  %v2552_v26 = vld [vmem:[#allocation5 + $0xa0] sm:$0xff] }
0x15c5   :  { %3290 = vmatprep.subr.mxu0 %v2553_v27 }
0x15c6   :  { %v2295_v1 = vsel %vm272_vm3, %v2289_v39, 0.0  ;;  %v2288_v63 = vmul.f32 %v2284_v38, %v2284_v38  ;;  %3291 = vmatpush3.msra.mxu0 %v2553_v27 }
0x15c7   :  { %2296 = vadd.xlane.f32.xlu0 %v2295_v1  ;;  %3292 = vmatprep.subr.mxu0 %v2552_v26 }
0x15c8   :  { %v2292_v62 = vsel %vm272_vm3, %v2288_v63, 0.0  ;;  %3293 = vmatpush3.msra.mxu0 %v2552_v26 }
0x15c9   :  { %2293 = vadd.xlane.f32.xlu1 %v2292_v62  ;;  %3294 = vmatprep.subr.mxu0 %v2551_v47 }
0x15ca   :  { %3295 = vmatpush3.msra.mxu0 %v2551_v47 }
0x15cb   :  { %3296 = vmatprep.subr.mxu0 %v2550_v14 }
0x15cc   :  { %v2276_v50 = vpop.xlane.xlu0 %2275  ;;  %3297 = vmatpush3.msra.mxu0 %v2550_v14 }
0x15cd   :  { %v2282_v40 = vmul.f32 0.125, %v2276_v50  ;;  %3298 = vmatprep.subr.mxu0 %v2549_v45 }
0x15ce   :  { %3299 = vmatpush3.msra.mxu0 %v2549_v45 }
0x15cf   :  { %v2286_v41 = vsub.f32 %v2264_v32, %v2282_v40  ;;  %3300 = vmatprep.subr.mxu0 %v2548_v28  ;;  %v2935_v32 = vld [vmem:[#allocation5 + $0xcb] ss:$0 sm:$0xff] }
0x15d0   :  { %v2279_v42 = vpop.xlane.xlu0 %2278  ;;  %3301 = vmatpush3.msra.mxu0 %v2548_v28 }
0x15d1   :  { %v2283_v52 = vmul.f32 0.125, %v2279_v42  ;;  %v2290_v53 = vmul.f32 %v2286_v41, %v2286_v41  ;;  %3302 = vmatprep.subr.mxu0 %v2547_v30 }
0x15d2   :  { %3303 = vmatpush3.msra.mxu0 %v2547_v30 }
0x15d3   :  { %v2287_v54 = vsub.f32 %v2265_v34, %v2283_v52  ;;  %v2298_v57 = vsel %vm272_vm3, %v2290_v53, 0.0 }
0x15d4   :  { %2299 = vadd.xlane.f32.xlu1 %v2298_v57 }
0x15d5   :  { %v2291_v58 = vmul.f32 %v2287_v54, %v2287_v54 }
0x15d7   :  { %v2301_v59 = vsel %vm272_vm3, %v2291_v58, 0.0 }
0x15d8   :  { %2302 = vadd.xlane.f32.xlu0 %v2301_v59 }
0x1650   :  { %v2297_v12 = vpop.xlane.xlu0 %2296 }
0x1651   :  { %v2305_v21 = vmul.f32 0.125, %v2297_v12 }
0x1652   :  { %v2294_v61 = vpop.xlane.xlu1 %2293 }
0x1653   :  { %v2309_v2 = vadd.f32 1e-05, %v2305_v21  ;;  %v2304_v48 = vmul.f32 0.125, %v2294_v61 }
0x1655   :  { %3425 = vrsqrt.f32 %v2309_v2  ;;  %v2308_v44 = vadd.f32 1e-05, %v2304_v48 }
0x1657   :  { %3427 = vrsqrt.f32 %v2308_v44 }
0x165d   :  { %v2300_v25 = vpop.xlane.xlu1 %2299 }
0x165e   :  { %v2306_v10 = vmul.f32 0.125, %v2300_v25 }
0x1660   :  { %v2310_v46 = vadd.f32 1e-05, %v2306_v10 }
0x1661   :  { %v2303_v0 = vpop.xlane.xlu0 %2302 }
0x1662   :  { %v3426_v49 = vpop.eup %3425  ;;  %3429 = vrsqrt.f32 %v2310_v46  ;;  %v2307_v4 = vmul.f32 0.125, %v2303_v0 }
0x1663   :  { %v2317_v51 = vmul.f32 %v3426_v49, %v2285_v29 }
0x1664   :  { %v3428_v43 = vpop.eup %3427  ;;  %v2311_v7 = vadd.f32 1e-05, %v2307_v4 }
0x1665   :  { %v2316_v8 = vmul.f32 %v3428_v43, %v2284_v38  ;;  %v2325_v33 = vmul.f32 %v2933_v5, %v2317_v51 }
0x1666   :  { %3431 = vrsqrt.f32 %v2311_v7 }
0x1667   :  { %v2324_v15 = vmul.f32 %v2933_v5, %v2316_v8  ;;  %v3991_v18 = vadd.f32 %v2934_v22, %v2325_v33 }
0x1669   :  { %v2332_v17 = vadd.f32 %v2934_v22, %v2324_v15 }
0x166b   :  { %3282 = vmatprep.mubr.msk.f32.mxu1 %vm272_vm3, %v2332_v17 }
0x166c   :  { %3283 = vmatmul.mubr.msk.f32.vlgmr.msra.gmra.mxu1 %vm272_vm3, %v3991_v18 }
0x166f   :  { %v3430_v19 = vpop.eup %3429 }
0x1670   :  { %v2318_v20 = vmul.f32 %v3430_v19, %v2286_v41 }
0x1672   :  { %v2326_v35 = vmul.f32 %v2933_v5, %v2318_v20 }
0x1673   :  { %v3432_v13 = vpop.eup %3431 }
0x1674   :  { %v2334_v23 = vadd.f32 %v2934_v22, %v2326_v35  ;;  %v2319_v24 = vmul.f32 %v3432_v13, %v2287_v54 }
0x1676   :  { %3285 = vmatprep.mubr.msk.f32.mxu1 %vm272_vm3, %v2334_v23  ;;  %v2327_v11 = vmul.f32 %v2933_v5, %v2319_v24 }
0x1678   :  { %v3997_v56 = vadd.f32 %v2934_v22, %v2327_v11 }
0x167a   :  { %3286 = vmatmul.mubr.msk.f32.gmra.mxu1 %vm272_vm3, %v3997_v56 }
0x172c   :  { %v3284_v34 = vpop.f32.mrf.mxu1 }
0x172d   :  { %v4001_v36 = vadd.f32 %v3284_v34, %v2935_v32 }
0x172e   :  { %v2420_v9 = vpop.f32.mrf.mxu1 }
0x172f   :  { %v4004_v37 = vmul.f32 0.70710677, %v4001_v36  ;;  %v4006_v55 = vadd.f32 %v2935_v32, %v2420_v9 }
0x1731   :  { %v2456_v16 = vand.u32 2147483647, %v4004_v37  ;;  %v4010_v29 = vmul.f32 0.70710677, %v4006_v55  ;;  %vm2448_vm9 = vcmp.ge.f32.partialorder %v4004_v37, 0.0 }
0x1733   :  { %v2460_v3 = vmul.f32 0.3275911, %v2456_v16  ;;  %v2455_v38 = vand.u32 2147483647, %v4010_v29  ;;  %v2512_v41 = vsub.f32 0.0, %v2456_v16  ;;  %vm2447_vm10 = vcmp.ge.f32.partialorder %v4010_v29, 0.0 }
0x1734   :  { %v2440_v29 = vmul.f32 0.5, %v4001_v36 }
0x1735   :  { %v2464_v39 = vadd.f32 1.0, %v2460_v3  ;;  %v2459_v1 = vmul.f32 0.3275911, %v2455_v38  ;;  %v2511_v57 = vsub.f32 0.0, %v2455_v38  ;;  %v2516_v58 = vmul.f32 %v2512_v41, %v2456_v16 }
0x1737   :  { %3433 = vrcp.f32 %v2464_v39  ;;  %v2463_v63 = vadd.f32 1.0, %v2459_v1  ;;  %v2515_v2 = vmul.f32 %v2511_v57, %v2455_v38  ;;  %v2521_v44 = vmul.f32 1.442695, %v2516_v58 }
0x1738   :  { %v2452_v39 = vsel %vm2448_vm9, 1.0, %v3537_v6  ;;  %v2451_v58 = vsel %vm2447_vm10, 1.0, %v3537_v6 }
0x1739   :  { %3435 = vrcp.f32 %v2463_v63  ;;  %v2519_v49 = vmul.f32 1.442695, %v2515_v2  ;;  %v2439_v2 = vmul.f32 0.5, %v4006_v55 }
0x173a   :  { %v3287_v62 = vpop.f32.mrf.mxu1 }
0x173b   :  { %v4013_v50 = vadd.f32 %v3287_v62, %v2935_v32 }
0x173c   :  { %v2430_v40 = vpop.f32.mrf.mxu1 }
0x173d   :  { %v4016_v42 = vmul.f32 0.70710677, %v4013_v50  ;;  %v4018_v52 = vadd.f32 %v2935_v32, %v2430_v40 }
0x173f   :  { %v2458_v53 = vand.u32 2147483647, %v4016_v42  ;;  %v4022_v54 = vmul.f32 0.70710677, %v4018_v52  ;;  %vm2450_vm11 = vcmp.ge.f32.partialorder %v4016_v42, 0.0 }
0x1741   :  { %v2462_v59 = vmul.f32 0.3275911, %v2458_v53  ;;  %v2457_v60 = vand.u32 2147483647, %v4022_v54  ;;  %v2514_v43 = vsub.f32 0.0, %v2458_v53  ;;  %vm2449_vm12 = vcmp.ge.f32.partialorder %v4022_v54, 0.0 }
0x1743   :  { %v2466_v12 = vadd.f32 1.0, %v2462_v59  ;;  %v2461_v21 = vmul.f32 0.3275911, %v2457_v60  ;;  %v2513_v22 = vsub.f32 0.0, %v2457_v60  ;;  %v2518_v17 = vmul.f32 %v2514_v43, %v2458_v53 }
0x1744   :  { %v3434_v61 = vpop.eup %3433 }
0x1745   :  { %v2476_v48 = vmul.f32 1.0614054, %v3434_v61  ;;  %3437 = vrcp.f32 %v2466_v12  ;;  %v2465_v25 = vadd.f32 1.0, %v2461_v21  ;;  %v2517_v23 = vmul.f32 %v2513_v22, %v2457_v60 }
0x1746   :  { %v3436_v10 = vpop.eup %3435  ;;  %v2525_v31 = vmul.f32 1.442695, %v2518_v17 }
0x1747   :  { %v2480_v46 = vadd.f32 -1.4531521, %v2476_v48  ;;  %v2475_v0 = vmul.f32 1.0614054, %v3436_v10  ;;  %3439 = vrcp.f32 %v2465_v25  ;;  %v2523_v32 = vmul.f32 1.442695, %v2517_v23 }
0x1748   :  { %3441 = vpow2.f32 %v2521_v44 }
0x1749   :  { %v2484_v4 = vmul.f32 %v3434_v61, %v2480_v46  ;;  %v2479_v51 = vadd.f32 -1.4531521, %v2475_v0  ;;  %3443 = vpow2.f32 %v2519_v49 }
0x174a   :  { %3445 = vpow2.f32 %v2525_v31 }
0x174b   :  { %v2488_v5 = vadd.f32 1.4214138, %v2484_v4  ;;  %v2483_v7 = vmul.f32 %v3436_v10, %v2479_v51  ;;  %3447 = vpow2.f32 %v2523_v32 }
0x174d   :  { %v2492_v8 = vmul.f32 %v3434_v61, %v2488_v5  ;;  %v2487_v33 = vadd.f32 1.4214138, %v2483_v7 }
0x174f   :  { %v2496_v15 = vadd.f32 -0.28449672, %v2492_v8  ;;  %v2491_v19 = vmul.f32 %v3436_v10, %v2487_v33  ;;  %v2454_v8 = vsel %vm2450_vm11, 1.0, %v3537_v6 }
0x1751   :  { %v2500_v20 = vmul.f32 %v3434_v61, %v2496_v15  ;;  %v2495_v13 = vadd.f32 -0.28449672, %v2491_v19  ;;  %v2453_v15 = vsel %vm2449_vm12, 1.0, %v3537_v6 }
0x1752   :  { %v3438_v35 = vpop.eup %3437 }
0x1753   :  { %v2504_v24 = vadd.f32 0.2548296, %v2500_v20  ;;  %v2478_v11 = vmul.f32 1.0614054, %v3438_v35  ;;  %v2499_v27 = vmul.f32 %v3436_v10, %v2495_v13  ;;  %v2441_v20 = vmul.f32 0.5, %v4018_v52 }
0x1754   :  { %v3440_v26 = vpop.eup %3439 }
0x1755   :  { %v2508_v47 = vmul.f32 %v3434_v61, %v2504_v24  ;;  %v2482_v14 = vadd.f32 -1.4531521, %v2478_v11  ;;  %v3442_v45 = vpop.eup %3441  ;;  %v2503_v28 = vadd.f32 0.2548296, %v2499_v27  ;;  %v2477_v30 = vmul.f32 1.0614054, %v3440_v26 }
0x1756   :  { %v3444_v38 = vpop.eup %3443  ;;  %v2940_v24 = vld [vmem:[#allocation5 + $0xcc] ss:$0 sm:$0xff] }
0x1757   :  { %v2528_v34 = vmul.f32 %v3442_v45, %v2508_v47  ;;  %v2486_v9 = vmul.f32 %v3438_v35, %v2482_v14  ;;  %v2507_v16 = vmul.f32 %v3436_v10, %v2503_v28  ;;  %v2481_v3 = vadd.f32 -1.4531521, %v2477_v30  ;;  %v3446_v4 = vpop.eup %3445 }
0x1758   :  { %v3448_v55 = vpop.eup %3447 }
0x1759   :  { %v2532_v1 = vsub.f32 1.0, %v2528_v34  ;;  %v2490_v63 = vadd.f32 1.4214138, %v2486_v9  ;;  %v2527_v62 = vmul.f32 %v3444_v38, %v2507_v16  ;;  %v2485_v37 = vmul.f32 %v3440_v26, %v2481_v3 }
0x175b   :  { %v2536_v40 = vmul.f32 %v2532_v1, %v2452_v39  ;;  %v2494_v41 = vmul.f32 %v3438_v35, %v2490_v63  ;;  %v2531_v53 = vsub.f32 1.0, %v2527_v62  ;;  %v2489_v57 = vadd.f32 1.4214138, %v2485_v37 }
0x175d   :  { %v2498_v59 = vadd.f32 -0.28449672, %v2494_v41  ;;  %v2535_v60 = vmul.f32 %v2531_v53, %v2451_v58  ;;  %v2493_v12 = vmul.f32 %v3440_v26, %v2489_v57  ;;  %v2540_v21 = vadd.f32 1.0, %v2536_v40  ;;  %v2945_v41 = vld [vmem:[#allocation5 + $0xcf] ss:$0 sm:$0xff] }
0x175e   :  { %v2946_v57 = vld [vmem:[#allocation5 + $0xd0] ss:$0 sm:$0xff] }
0x175f   :  { %v2502_v61 = vmul.f32 %v3438_v35, %v2498_v59  ;;  %v2539_v48 = vadd.f32 1.0, %v2535_v60  ;;  %v2497_v44 = vadd.f32 -0.28449672, %v2493_v12  ;;  %v2544_v0 = vmul.f32 %v2540_v21, %v2440_v29 }
0x1761   :  { %v2506_v25 = vadd.f32 0.2548296, %v2502_v61  ;;  %v2543_v10 = vmul.f32 %v2539_v48, %v2439_v2  ;;  %v2501_v46 = vmul.f32 %v3440_v26, %v2497_v44 }
0x1763   :  { %v2510_v49 = vmul.f32 %v3438_v35, %v2506_v25  ;;  %v2505_v51 = vadd.f32 0.2548296, %v2501_v46  ;;  %3304 = vmatprep.mubr.msk.f32.mxu0 %vm1328_vm6, %v2543_v10  ;;  %v2442_v35 = vmul.f32 0.5, %v4013_v50 }
0x1764   :  { %3305 = vmatmul.mubr.msk.f32.vlgmr.msra.gmra.mxu0 %vm1328_vm6, %v2544_v0 }
0x1765   :  { %v2530_v5 = vmul.f32 %v3446_v4, %v2510_v49  ;;  %v2509_v43 = vmul.f32 %v3440_v26, %v2505_v51 }
0x1767   :  { %v2534_v7 = vsub.f32 1.0, %v2530_v5  ;;  %v2529_v36 = vmul.f32 %v3448_v55, %v2509_v43  ;;  %v2745_v43 = vld [vmem:[#allocation5 + $0xb8] sm:$0xff]  ;;  %v3538_v55 = vmov 0.0  }
0x1768   :  { %3310 = vmatprep.subr.mxu1 %v3538_v55  ;;  %3312 = vmatprep.mubr.msk.f32.mxu1 %vm3539_vm13, %v3538_v55 }
0x1769   :  { %v2538_v33 = vmul.f32 %v2534_v7, %v2454_v8  ;;  %v2533_v22 = vsub.f32 1.0, %v2529_v36  ;;  %3311 = vmatpush3.msra.mxu1 %v2745_v43 }
0x176b   :  { %v2537_v17 = vmul.f32 %v2533_v22, %v2453_v15  ;;  %v2542_v19 = vadd.f32 1.0, %v2538_v33 }
0x176d   :  { %v2541_v42 = vadd.f32 1.0, %v2537_v17  ;;  %v2546_v23 = vmul.f32 %v2542_v19, %v2442_v35 }
0x176f   :  { %v2545_v13 = vmul.f32 %v2541_v42, %v2441_v20  ;;  %v2947_v20 = vld [vmem:[#allocation5 + $0xd1] ss:$0 sm:$0xff] }
0x1771   :  { %3307 = vmatprep.mubr.msk.f32.mxu0 %vm1328_vm6, %v2545_v13  ;;  %v2948_v13 = vld [vmem:[#allocation5 + $0xd2] ss:$0 sm:$0xff] }
0x1772   :  { %3308 = vmatmul.mubr.msk.f32.gmra.mxu0 %vm1328_vm6, %v2546_v23 }
0x1824   :  { %v3306_v54 = vpop.f32.mrf.mxu0 }
0x1825   :  { %v2643_v11 = vadd.f32 %v3306_v54, %v2940_v24 }
0x1826   :  { %v2638_v31 = vpop.f32.mrf.mxu0 }
0x1827   :  { %v2655_v27 = vadd.f32 %v2643_v11, %v3991_v18 }
0x1829   :  { %v2659_v6 = vsel %vm272_vm3, %v2655_v27, 0.0 }
0x182a   :  { %2660 = vadd.xlane.f32.xlu1 %v2659_v6 }
0x1832   :  { %v3309_v26 = vpop.f32.mrf.mxu0 }
0x1833   :  { %v2652_v52 = vadd.f32 %v3309_v26, %v2940_v24  ;;  %v2949_v26 = vld [vmem:[#allocation5 + $0xd3] ss:$0 sm:$0xff] }
0x1834   :  { %v2647_v47 = vpop.f32.mrf.mxu0 }
0x1835   :  { %v2656_v50 = vadd.f32 %v2652_v52, %v3997_v56 }
0x1837   :  { %v2662_v14 = vsel %vm272_vm3, %v2656_v50, 0.0 }
0x1838   :  { %2663 = vadd.xlane.f32.xlu0 %v2662_v14 }
0x18b3   :  { %v2661_v45 = vpop.xlane.xlu1 %2660 }
0x18b4   :  { %v2665_v28 = vmul.f32 0.125, %v2661_v45 }
0x18b6   :  { %v2667_v30 = vsub.f32 %v2655_v27, %v2665_v28 }
0x18b8   :  { %v2669_v32 = vmul.f32 %v2667_v30, %v2667_v30 }
0x18ba   :  { %v2671_v34 = vsel %vm272_vm3, %v2669_v32, 0.0 }
0x18bb   :  { %2672 = vadd.xlane.f32.xlu1 %v2671_v34 }
0x18c1   :  { %v2664_v9 = vpop.xlane.xlu0 %2663 }
0x18c2   :  { %v2666_v18 = vmul.f32 0.125, %v2664_v9 }
0x18c4   :  { %v2668_v16 = vsub.f32 %v2656_v50, %v2666_v18 }
0x18c6   :  { %v2670_v3 = vmul.f32 %v2668_v16, %v2668_v16 }
0x18c8   :  { %v2674_v38 = vsel %vm272_vm3, %v2670_v3, 0.0 }
0x18c9   :  { %2675 = vadd.xlane.f32.xlu0 %v2674_v38 }
0x1944   :  { %v2673_v39 = vpop.xlane.xlu1 %2672 }
0x1945   :  { %v2677_v1 = vmul.f32 0.125, %v2673_v39 }
0x1947   :  { %v2679_v56 = vadd.f32 1e-05, %v2677_v1 }
0x1949   :  { %3449 = vrsqrt.f32 %v2679_v56 }
0x1952   :  { %v2676_v63 = vpop.xlane.xlu0 %2675 }
0x1953   :  { %v2678_v62 = vmul.f32 0.125, %v2676_v63 }
0x1955   :  { %v2680_v37 = vadd.f32 1e-05, %v2678_v62 }
0x1956   :  { %v3450_v40 = vpop.eup %3449 }
0x1957   :  { %3451 = vrsqrt.f32 %v2680_v37  ;;  %v2683_v53 = vmul.f32 %v3450_v40, %v2667_v30 }
0x1959   :  { %v2689_v58 = vmul.f32 %v2945_v41, %v2683_v53 }
0x195b   :  { %v2695_v59 = vadd.f32 %v2946_v57, %v2689_v58 }
0x195d   :  { %v2699_v60 = vsel %vm272_vm3, %v2695_v59, 0.0 }
0x195e   :  { %2700 = vadd.xlane.f32.xlu1 %v2699_v60 }
0x1964   :  { %v3452_v12 = vpop.eup %3451 }
0x1965   :  { %v2684_v21 = vmul.f32 %v3452_v12, %v2668_v16 }
0x1967   :  { %v2690_v61 = vmul.f32 %v2945_v41, %v2684_v21 }
0x1969   :  { %v2696_v2 = vadd.f32 %v2946_v57, %v2690_v61 }
0x196b   :  { %v2702_v48 = vsel %vm272_vm3, %v2696_v2, 0.0 }
0x196c   :  { %2703 = vadd.xlane.f32.xlu0 %v2702_v48 }
0x19e7   :  { %v2701_v44 = vpop.xlane.xlu1 %2700 }
0x19e8   :  { %v2705_v29 = vmul.f32 0.125, %v2701_v44 }
0x19ea   :  { %v2707_v25 = vsub.f32 %v2695_v59, %v2705_v29 }
0x19ec   :  { %v2709_v10 = vmul.f32 %v2707_v25, %v2707_v25 }
0x19ee   :  { %v2711_v46 = vsel %vm272_vm3, %v2709_v10, 0.0 }
0x19ef   :  { %2712 = vadd.xlane.f32.xlu1 %v2711_v46 }
0x19f5   :  { %v2704_v0 = vpop.xlane.xlu0 %2703 }
0x19f6   :  { %v2706_v49 = vmul.f32 0.125, %v2704_v0 }
0x19f8   :  { %v2708_v4 = vsub.f32 %v2696_v2, %v2706_v49 }
0x19fa   :  { %v2710_v51 = vmul.f32 %v2708_v4, %v2708_v4 }
0x19fc   :  { %v2714_v5 = vsel %vm272_vm3, %v2710_v51, 0.0 }
0x19fd   :  { %2715 = vadd.xlane.f32.xlu0 %v2714_v5 }
0x1a78   :  { %v2713_v7 = vpop.xlane.xlu1 %2712 }
0x1a79   :  { %v2717_v8 = vmul.f32 0.125, %v2713_v7 }
0x1a7b   :  { %v2719_v36 = vadd.f32 1e-05, %v2717_v8 }
0x1a7d   :  { %3453 = vrsqrt.f32 %v2719_v36 }
0x1a86   :  { %v2716_v33 = vpop.xlane.xlu0 %2715 }
0x1a87   :  { %v2718_v22 = vmul.f32 0.125, %v2716_v33 }
0x1a89   :  { %v2720_v15 = vadd.f32 1e-05, %v2718_v22 }
0x1a8a   :  { %v3454_v17 = vpop.eup %3453 }
0x1a8b   :  { %3455 = vrsqrt.f32 %v2720_v15  ;;  %v2723_v19 = vmul.f32 %v3454_v17, %v2707_v25 }
0x1a8d   :  { %v2729_v42 = vmul.f32 %v2947_v20, %v2723_v19 }
0x1a8f   :  { %v2735_v54 = vadd.f32 %v2948_v13, %v2729_v42 }
0x1a91   :  { %v2738_v31 = vrot.slane %v2735_v54, 7 }
0x1a98   :  { %v3456_v35 = vpop.eup %3455 }
0x1a99   :  { %v2724_v23 = vmul.f32 %v3456_v35, %v2708_v4 }
0x1a9b   :  { %v2730_v24 = vmul.f32 %v2947_v20, %v2724_v23 }
0x1a9d   :  { %v2736_v11 = vadd.f32 %v2948_v13, %v2730_v24 }
0x1a9f   :  { %v2741_v27 = vrot.slane %v2736_v11, 6 }
0x1aa1   :  { %v2744_v6 = vsel %vm2743_vm14, %v2738_v31, %v2741_v27 }
0x1aa2   :  { %3313 = vmatmul.mubr.msk.f32.vlgmr.msra.gmra.mxu1 %vm272_vm3, %v2744_v6 }
0x1b62   :  { %v2820_v52 = vpop.f32.mrf.mxu1 }
0x1b63   :  { %v2821_v47 = vadd.f32 %v2949_v26, %v2820_v52 }
0x1b64   :  { %v3314_v50 = vpop.f32.mrf.mxu1 }
0x1b65   :  { %2824 = vst [vmem:[#allocation7] sm:$0x3] %v2821_v47 }
0x1b66   :  { %3512 = shalt.err (!%p3509_p0)
}
0x1b67   :  { %2834 = dma.vmem_to_hbm [thread:$0]  %s2832_s9, 32, %s4058_s3, [#allocation4]  }
0x1b68   :  { %3525 = dma.done.wait [#allocation4], 32  }
0x1b69   :  { %3526 = vsyncadd [#allocation4], 4294967264 }
0x1b6a   :  { %2838 = vsyncpa [#allocation3], 1 }
0x1b6b   :  { %2839 = vsyncpa [#allocation6], 1 }
0x1b6c   :  { %2840 = vsyncpa [#allocation4], 1 }

</bundles_post_ra>
